<compile_context>
chip_gen: v7x
topology: tpu7x:2x2x1
jax: 0.10.0
libtpu: 0.0.40
codegen_flags: <defaults>
</compile_context>

<pallas_src>
import jax
import jax.numpy as jnp
from jax.experimental import pallas as pl
from jax.experimental.pallas import tpu as pltpu


def make_wavenet_kernel(dilations, t_real, tp, b_blk):
    """Fused WaveNet kernel for a static tuple of block dilations.

    One grid step processes b_blk batch elements flattened into the lane axis
    as (channels, b_blk * tp)."""
    bf16 = jnp.bfloat16

    def kernel(x_ref, cc_w_ref, cc_b_ref, fg_w_ref, fg_b_ref,
               rs_w_ref, rs_b_ref, fin_w_ref, fin_b_ref,
               out_w_ref, out_b_ref,
               out_ref, stats_ref):
        x = x_ref[...]                                   # (E, N) bf16
        n_lanes = x.shape[1]

        # Per-segment time index: [0..tp-1, 0..tp-1, ...] along lanes.
        base_col = jax.lax.broadcasted_iota(jnp.int32, (1, tp), 1)
        tcol = jnp.tile(base_col, (1, b_blk)) if b_blk > 1 else base_col

        # Hoisted masks, one per unique dilation (initial conv uses d=1).
        masks = {d: tcol >= d for d in sorted({1, *dilations})}

        def shift_right(a, d):
            # a[:, t] -> a[:, t-d] within each tp-wide batch segment, zero for
            # t < d (causal pad).  Roll wrap / cross-segment leakage lands
            # only in columns with tcol < d, which the mask zeroes.
            return jnp.where(masks[d], pltpu.roll(a, shift=d, axis=1), 0.0)

        def mm(w_bf16, a):
            # bf16 x bf16 on the MXU, f32 accumulation.
            return jnp.dot(w_bf16, a.astype(bf16),
                           preferred_element_type=jnp.float32)

        r_ch = cc_w_ref.shape[0] // 2
        d_ch = fg_b_ref.shape[1] // 2

        # Initial causal conv (dilation 1), taps stacked on output rows:
        #   [W1; W0] @ x -> take top R rows + shifted bottom R rows.
        y = mm(cc_w_ref[...], x)                         # (2R, N) f32
        residual = y[:r_ch] + shift_right(y[r_ch:], 1) + cc_b_ref[...]

        # Residual blocks (statically unrolled; nb is small here).
        skips = None
        for i, d in enumerate(dilations):
            fg4 = mm(fg_w_ref[i], residual)              # (4D, N) f32
            fg = (fg4[:2 * d_ch] + shift_right(fg4[2 * d_ch:], d)
                  + fg_b_ref[i])                         # (2D, N)
            zf = jnp.tanh(fg[:d_ch])
            zg = 0.5 * (1.0 + jnp.tanh(0.5 * fg[d_ch:]))  # sigmoid, 1 EUP push
            z = zf * zg                                  # (D, N) f32
            rs = mm(rs_w_ref[i], z) + rs_b_ref[i]        # (R+S, N) f32
            residual = residual + rs[:r_ch]
            skips = rs[r_ch:] if skips is None else skips + rs[r_ch:]

        if skips is None:                                # no residual blocks
            skips = jnp.zeros((fin_w_ref.shape[1], n_lanes), jnp.float32)

        act = jnp.maximum(skips, 0.0)                    # relu
        act = mm(fin_w_ref[...], act) + fin_b_ref[...]
        act = jnp.maximum(act, 0.0)                      # (F, N) f32

        # Per-batch-segment masked mean / max over the real time columns only
        # (padded columns hold bias-polluted garbage and must be excluded).
        seg_valid = base_col < t_real                    # (1, tp) bool
        inv_t = jnp.float32(1.0 / t_real)
        neg_inf = jnp.float32(-jnp.inf)
        means, maxes = [], []
        for j in range(b_blk):
            seg = act[:, j * tp:(j + 1) * tp]            # static slice (F, tp)
            means.append(jnp.sum(jnp.where(seg_valid, seg, 0.0),
                                 axis=1, keepdims=True) * inv_t)
            maxes.append(jnp.max(jnp.where(seg_valid, seg, neg_inf),
                                 axis=1, keepdims=True))
        stats = jnp.concatenate(
            [jnp.concatenate(means, axis=1),
             jnp.concatenate(maxes, axis=1)], axis=0)    # (2F, b_blk) f32
        stats_ref[...] = stats[None]

        # Output 1x1 conv; bf16 store halves the dominant HBM writeback.
        logits = mm(out_w_ref[...], act) + out_b_ref[...]
        out_ref[...] = logits.astype(out_ref.dtype)      # (V, N) bf16

    return kernel


def wavenet_forward(tokens, params, dilations, batch_block=None):
    bf16 = jnp.bfloat16
    # Glue: embedding gather + NCL permute + lane padding in plain JAX.
    emb = params["emb"][tokens]                               # (B, T, E)
    x = jnp.transpose(emb, (0, 2, 1))                         # (B, E, T)
    B, E, T = x.shape
    Tp = ((T + 127) // 128) * 128                             # lane-dense time

    # Fold batch into lanes: aim for ~512 lanes per matmul; on v7x you may
    # prefer a smaller batch_block so the grid has >= 2 steps (2 TensorCores).
    if batch_block is None:
        batch_block = max(1, min(B, max(1, 512 // Tp)))
    Bb = batch_block
    Bp = ((B + Bb - 1) // Bb) * Bb                            # padded batch
    n_grid = Bp // Bb
    N_blk = Bb * Tp

    x = jnp.pad(x, ((0, Bp - B), (0, 0), (0, Tp - T))).astype(bf16)
    x_flat = jnp.transpose(x, (1, 0, 2)).reshape(E, Bp * Tp)  # (E, Bp*Tp)

    R = params["cc_w1"].shape[0]
    D = params["fw1"].shape[1]
    S = params["sw"].shape[1]
    F = params["fin_w"].shape[0]
    V = params["out_w"].shape[0]
    nb = len(dilations)

    # Fuse conv taps on OUTPUT rows ([current; past]) and filter|gate /
    # residual|skip projections into single fat matrices; cast matmul weights
    # to bf16 (biases stay f32).
    cc_w = jnp.concatenate([params["cc_w1"], params["cc_w0"]],
                           axis=0).astype(bf16)                   # (2R, E)
    fg_w = jnp.concatenate([params["fw1"], params["gw1"],
                            params["fw0"], params["gw0"]],
                           axis=1).astype(bf16)                   # (nb, 4D, R)
    fg_b = jnp.concatenate([params["fb"], params["gb"]], axis=1)  # (nb, 2D, 1)
    rs_w = jnp.concatenate([params["rw"], params["sw"]],
                           axis=1).astype(bf16)                   # (nb, R+S, D)
    rs_b = jnp.concatenate([params["rb"], params["sb"]], axis=1)  # (nb, R+S, 1)
    fin_w = params["fin_w"].astype(bf16)
    out_w = params["out_w"].astype(bf16)

    weights = [cc_w, params["cc_b"], fg_w, fg_b, rs_w, rs_b,
               fin_w, params["fin_b"], out_w, params["out_b"]]

    def const_spec(a):
        nd = a.ndim
        return pl.BlockSpec(a.shape, lambda g, nd=nd: (0,) * nd)

    # Advisory cost estimate for the XLA scheduler.
    N_total = Bp * Tp
    flops = N_total * (2 * (2 * R) * E
                       + nb * (2 * (4 * D) * R + 2 * (R + S) * D)
                       + 2 * F * S + 2 * V * F)
    transcendentals = N_total * nb * 2 * D
    bytes_accessed = int(E * N_total * 2
                         + sum(int(a.size) * a.dtype.itemsize for a in weights)
                         + V * N_total * 2
                         + n_grid * 2 * F * Bb * 4)

    kernel = make_wavenet_kernel(tuple(int(d) for d in dilations), T, Tp, Bb)
    out_flat, stats = pl.pallas_call(
        kernel,
        grid=(n_grid,),
        in_specs=[pl.BlockSpec((E, N_blk), lambda g: (0, g))]
                 + [const_spec(a) for a in weights],
        out_specs=[pl.BlockSpec((V, N_blk), lambda g: (0, g)),
                   pl.BlockSpec((1, 2 * F, Bb), lambda g: (g, 0, 0))],
        out_shape=[jax.ShapeDtypeStruct((V, Bp * Tp), bf16),
                   jax.ShapeDtypeStruct((n_grid, 2 * F, Bb), jnp.float32)],
        compiler_params=pltpu.CompilerParams(
            dimension_semantics=("parallel",),
            # 48 MiB is safe on v7x (64 MiB physical); v5e/v6e could go higher.
            vmem_limit_bytes=48 * 1024 * 1024),
        cost_estimate=pl.CostEstimate(flops=flops,
                                      transcendentals=transcendentals,
                                      bytes_accessed=bytes_accessed),
    )(x_flat, *weights)

    # Un-flatten / un-pad in glue.
    logits = out_flat.reshape(V, Bp, Tp).transpose(1, 0, 2)[:B, :, :T]
    logits = logits.astype(jnp.float32)
    stats = stats.transpose(0, 2, 1).reshape(Bp, 2 * F)[:B]
    return {"output": logits,
            "emb_1": stats[:, :F],
            "emb_2": stats[:, F:]}


def init_params(key, n_tokens, E, R, D, S, F, n_blocks):
    """Deterministic synthetic parameters matching the PyTorch module shapes.
    Conv1d kernel_size=2 weights are split into taps: w0 (past), w1 (current)."""
    ks = iter(jax.random.split(key, 32))

    def u(shape, fan_in):
        bound = 1.0 / float(fan_in) ** 0.5
        return jax.random.uniform(next(ks), shape, jnp.float32, -bound, bound)

    emb = jax.random.normal(next(ks), (n_tokens, E), jnp.float32)
    emb = emb.at[0].set(0.0)                            # padding_idx = 0

    p = {"emb": emb}
    # causal_conv: Conv1d(E -> R, kernel=2, dilation=1)
    p["cc_w0"] = u((R, E), 2 * E)
    p["cc_w1"] = u((R, E), 2 * E)
    p["cc_b"] = u((R, 1), 2 * E)
    # residual blocks (stacked over blocks)
    p["fw0"] = u((n_blocks, D, R), 2 * R)
    p["fw1"] = u((n_blocks, D, R), 2 * R)
    p["fb"] = u((n_blocks, D, 1), 2 * R)
    p["gw0"] = u((n_blocks, D, R), 2 * R)
    p["gw1"] = u((n_blocks, D, R), 2 * R)
    p["gb"] = u((n_blocks, D, 1), 2 * R)
    p["rw"] = u((n_blocks, R, D), D)
    p["rb"] = u((n_blocks, R, 1), D)
    p["sw"] = u((n_blocks, S, D), D)
    p["sb"] = u((n_blocks, S, 1), D)
    # final / output 1x1 convs
    p["fin_w"] = u((F, S), S)
    p["fin_b"] = u((F, 1), S)
    p["out_w"] = u((n_tokens, F), F)
    p["out_b"] = u((n_tokens, 1), F)
    return p


def ref_forward(tokens, params, dilations):
    """Pure-JAX f32 reference mirroring the PyTorch forward, for validation."""
    emb = params["emb"][tokens]                         # (B, T, E)
    x = jnp.transpose(emb, (0, 2, 1))                   # (B, E, T)

    def shift(a, d):
        if d == 0:
            return a
        return jnp.pad(a[:, :, :-d], ((0, 0), (0, 0), (d, 0)))

    def cconv(a, w0, w1, b, d):
        return (jnp.einsum("oc,bct->bot", w1, a)
                + jnp.einsum("oc,bct->bot", w0, shift(a, d))
                + b[None])

    residual = cconv(x, params["cc_w0"], params["cc_w1"], params["cc_b"], 1)
    skips = jnp.zeros((x.shape[0], params["sb"].shape[1], x.shape[2]),
                      jnp.float32)
    for i, d in enumerate(dilations):
        x_f = cconv(residual, params["fw0"][i], params["fw1"][i],
                    params["fb"][i], d)
        x_g = cconv(residual, params["gw0"][i], params["gw1"][i],
                    params["gb"][i], d)
        z = jnp.tanh(x_f) * jax.nn.sigmoid(x_g)
        skips = skips + jnp.einsum("oc,bct->bot", params["sw"][i], z) \
            + params["sb"][i][None]
        residual = residual + jnp.einsum("oc,bct->bot", params["rw"][i], z) \
            + params["rb"][i][None]

    act = jnp.maximum(skips, 0.0)
    act = jnp.einsum("oc,bct->bot", params["fin_w"], act) + params["fin_b"][None]
    act = jnp.maximum(act, 0.0)
    emb1 = act.mean(axis=2)
    emb2 = act.max(axis=2)
    out = jnp.einsum("oc,bct->bot", params["out_w"], act) + params["out_b"][None]
    return {"output": out, "emb_1": emb1, "emb_2": emb2}


if __name__ == "__main__":
    # Small shapes consistent with the module defaults.
    n_tokens, embedding_size = 32, 8
    R = D = S = F = 16
    n_dilations, n_repeats = 4, 1
    dilations = ([2 ** i for i in range(n_dilations)] * n_repeats)[1:]  # [2, 4, 8]
    B, T = 2, 32

    key = jax.random.PRNGKey(0)
    k_tok, k_par = jax.random.split(key)
    tokens = jax.random.randint(k_tok, (B, T), 0, n_tokens)
    params = init_params(k_par, n_tokens, embedding_size, R, D, S, F,
                         len(dilations))

    out = wavenet_forward(tokens, params, dilations)
    out = jax.tree_util.tree_map(jax.block_until_ready, out)

    ref = ref_forward(tokens, params, dilations)
    assert out["output"].shape == (B, n_tokens, T)
    assert out["emb_1"].shape == (B, F)
    assert out["emb_2"].shape == (B, F)
    # Looser tolerances: matmul operands, the embedding slab and the logits
    # store are bf16 (accumulation stays f32).
    assert jnp.allclose(out["output"], ref["output"], atol=5e-2, rtol=5e-2)
    assert jnp.allclose(out["emb_1"], ref["emb_1"], atol=5e-2, rtol=5e-2)
    assert jnp.allclose(out["emb_2"], ref["emb_2"], atol=5e-2, rtol=5e-2)
    print("KERNEL_OK")
</pallas_src>

<mosaic_0001>
module attributes {stable_mosaic.version = 11 : i64} {
  func.func @kernel(%arg0: i32, %arg1: memref<8x256xbf16, #tpu.memory_space<vmem>>, %arg2: memref<32x8xbf16, #tpu.memory_space<vmem>>, %arg3: memref<16x1xf32, #tpu.memory_space<vmem>>, %arg4: memref<3x64x16xbf16, #tpu.memory_space<vmem>>, %arg5: memref<3x32x1xf32, #tpu.memory_space<vmem>>, %arg6: memref<3x32x16xbf16, #tpu.memory_space<vmem>>, %arg7: memref<3x32x1xf32, #tpu.memory_space<vmem>>, %arg8: memref<16x16xbf16, #tpu.memory_space<vmem>>, %arg9: memref<16x1xf32, #tpu.memory_space<vmem>>, %arg10: memref<32x16xbf16, #tpu.memory_space<vmem>>, %arg11: memref<32x1xf32, #tpu.memory_space<vmem>>, %arg12: memref<32x256xbf16, #tpu.memory_space<vmem>>, %arg13: memref<1x32x2xf32, #tpu.memory_space<vmem>>) attributes {dimension_semantics = [#tpu.dimension_semantics<parallel>], iteration_bounds = array<i64: 1>, scalar_prefetch = 0 : i64, scratch_operands = 0 : i64, tpu.core_type = #tpu.core_type<tc>, window_params = [{transform_indices = @transform_0, window_bounds = array<i64: 8, 256>}, {pipeline_mode = #tpu.pipeline_mode<synchronous>, transform_indices = @transform_1, window_bounds = array<i64: 32, 8>}, {pipeline_mode = #tpu.pipeline_mode<synchronous>, transform_indices = @transform_2, window_bounds = array<i64: 16, 1>}, {pipeline_mode = #tpu.pipeline_mode<synchronous>, transform_indices = @transform_3, window_bounds = array<i64: 3, 64, 16>}, {pipeline_mode = #tpu.pipeline_mode<synchronous>, transform_indices = @transform_4, window_bounds = array<i64: 3, 32, 1>}, {pipeline_mode = #tpu.pipeline_mode<synchronous>, transform_indices = @transform_5, window_bounds = array<i64: 3, 32, 16>}, {pipeline_mode = #tpu.pipeline_mode<synchronous>, transform_indices = @transform_6, window_bounds = array<i64: 3, 32, 1>}, {pipeline_mode = #tpu.pipeline_mode<synchronous>, transform_indices = @transform_7, window_bounds = array<i64: 16, 16>}, {pipeline_mode = #tpu.pipeline_mode<synchronous>, transform_indices = @transform_8, window_bounds = array<i64: 16, 1>}, {pipeline_mode = #tpu.pipeline_mode<synchronous>, transform_indices = @transform_9, window_bounds = array<i64: 32, 16>}, {pipeline_mode = #tpu.pipeline_mode<synchronous>, transform_indices = @transform_10, window_bounds = array<i64: 32, 1>}, {transform_indices = @transform_11, window_bounds = array<i64: 32, 256>}, {transform_indices = @transform_12, window_bounds = array<i64: 1, 32, 2>}]} {
    %c0 = arith.constant 0 : index
    %c0_0 = arith.constant 0 : index
    %0 = vector.load %arg1[%c0, %c0_0] : memref<8x256xbf16, #tpu.memory_space<vmem>>, vector<8x256xbf16>
    %1 = tpu.iota {dimensions = array<i32: 1>} : vector<1x128xi32>
    %2 = tpu.concatenate %1, %1 in 1 : vector<1x128xi32>, vector<1x128xi32> -> vector<1x256xi32>
    %c1_i32 = arith.constant 1 : i32
    %3 = vector.broadcast %c1_i32 : i32 to vector<1x256xi32>
    %4 = arith.cmpi sge, %2, %3 : vector<1x256xi32>
    %c2_i32 = arith.constant 2 : i32
    %5 = vector.broadcast %c2_i32 : i32 to vector<1x256xi32>
    %6 = arith.cmpi sge, %2, %5 : vector<1x256xi32>
    %c4_i32 = arith.constant 4 : i32
    %7 = vector.broadcast %c4_i32 : i32 to vector<1x256xi32>
    %8 = arith.cmpi sge, %2, %7 : vector<1x256xi32>
    %c8_i32 = arith.constant 8 : i32
    %9 = vector.broadcast %c8_i32 : i32 to vector<1x256xi32>
    %10 = arith.cmpi sge, %2, %9 : vector<1x256xi32>
    %c0_1 = arith.constant 0 : index
    %c0_2 = arith.constant 0 : index
    %11 = vector.load %arg2[%c0_1, %c0_2] : memref<32x8xbf16, #tpu.memory_space<vmem>>, vector<32x8xbf16>
    %cst = arith.constant dense<0.000000e+00> : vector<32x256xf32>
    %12 = tpu.matmul %11, %0, %cst {dimension_numbers = #tpu.dot_dimension_numbers<[1], [0], [0], [1], [0, 0, 1, 1], [], []>} : vector<32x8xbf16>, vector<8x256xbf16>, vector<32x256xf32> -> vector<32x256xf32>
    %13 = vector.extract_strided_slice %12 {offsets = [0, 0], sizes = [16, 256], strides = [1, 1]} : vector<32x256xf32> to vector<16x256xf32>
    %14 = vector.extract_strided_slice %12 {offsets = [16, 0], sizes = [16, 256], strides = [1, 1]} : vector<32x256xf32> to vector<16x256xf32>
    %c1_i32_3 = arith.constant 1 : i32
    %15 = tpu.dynamic_rotate %14 by %c1_i32_3 dim 1 : vector<16x256xf32>, i32 -> vector<16x256xf32>
    %cst_4 = arith.constant 0.000000e+00 : f32
    %16 = vector.shape_cast %4 : vector<1x256xi1> to vector<1x256xi1>
    %17 = vector.broadcast %16 : vector<1x256xi1> to vector<16x256xi1>
    %18 = vector.broadcast %cst_4 : f32 to vector<16x256xf32>
    %19 = arith.select %17, %15, %18 : vector<16x256xi1>, vector<16x256xf32>
    %20 = arith.addf %13, %19 : vector<16x256xf32>
    %c0_5 = arith.constant 0 : index
    %c0_6 = arith.constant 0 : index
    %21 = vector.load %arg3[%c0_5, %c0_6] : memref<16x1xf32, #tpu.memory_space<vmem>>, vector<16x1xf32>
    %22 = vector.broadcast %21 : vector<16x1xf32> to vector<16x256xf32>
    %23 = arith.addf %20, %22 : vector<16x256xf32>
    %c0_7 = arith.constant 0 : index
    %c0_8 = arith.constant 0 : index
    %c0_9 = arith.constant 0 : index
    %24 = vector.load %arg4[%c0_7, %c0_8, %c0_9] : memref<3x64x16xbf16, #tpu.memory_space<vmem>>, vector<1x64x16xbf16>
    %25 = vector.shape_cast %24 : vector<1x64x16xbf16> to vector<64x16xbf16>
    %26 = arith.truncf %23 : vector<16x256xf32> to vector<16x256xbf16>
    %cst_10 = arith.constant dense<0.000000e+00> : vector<64x256xf32>
    %27 = tpu.matmul %25, %26, %cst_10 {dimension_numbers = #tpu.dot_dimension_numbers<[1], [0], [0], [1], [0, 0, 1, 1], [], []>} : vector<64x16xbf16>, vector<16x256xbf16>, vector<64x256xf32> -> vector<64x256xf32>
    %28 = vector.extract_strided_slice %27 {offsets = [0, 0], sizes = [32, 256], strides = [1, 1]} : vector<64x256xf32> to vector<32x256xf32>
    %29 = vector.extract_strided_slice %27 {offsets = [32, 0], sizes = [32, 256], strides = [1, 1]} : vector<64x256xf32> to vector<32x256xf32>
    %c2_i32_11 = arith.constant 2 : i32
    %30 = tpu.dynamic_rotate %29 by %c2_i32_11 dim 1 : vector<32x256xf32>, i32 -> vector<32x256xf32>
    %cst_12 = arith.constant 0.000000e+00 : f32
    %31 = vector.shape_cast %6 : vector<1x256xi1> to vector<1x256xi1>
    %32 = vector.broadcast %31 : vector<1x256xi1> to vector<32x256xi1>
    %33 = vector.broadcast %cst_12 : f32 to vector<32x256xf32>
    %34 = arith.select %32, %30, %33 : vector<32x256xi1>, vector<32x256xf32>
    %35 = arith.addf %28, %34 : vector<32x256xf32>
    %c0_13 = arith.constant 0 : index
    %c0_14 = arith.constant 0 : index
    %c0_15 = arith.constant 0 : index
    %36 = vector.load %arg5[%c0_13, %c0_14, %c0_15] : memref<3x32x1xf32, #tpu.memory_space<vmem>>, vector<1x32x1xf32>
    %37 = vector.shape_cast %36 : vector<1x32x1xf32> to vector<32x1xf32>
    %38 = vector.broadcast %37 : vector<32x1xf32> to vector<32x256xf32>
    %39 = arith.addf %35, %38 : vector<32x256xf32>
    %40 = vector.extract_strided_slice %39 {offsets = [0, 0], sizes = [16, 256], strides = [1, 1]} : vector<32x256xf32> to vector<16x256xf32>
    %41 = math.tanh %40 : vector<16x256xf32>
    %42 = vector.extract_strided_slice %39 {offsets = [16, 0], sizes = [16, 256], strides = [1, 1]} : vector<32x256xf32> to vector<16x256xf32>
    %cst_16 = arith.constant 5.000000e-01 : f32
    %43 = vector.broadcast %cst_16 : f32 to vector<16x256xf32>
    %44 = arith.mulf %43, %42 : vector<16x256xf32>
    %45 = math.tanh %44 : vector<16x256xf32>
    %cst_17 = arith.constant 1.000000e+00 : f32
    %46 = vector.broadcast %cst_17 : f32 to vector<16x256xf32>
    %47 = arith.addf %46, %45 : vector<16x256xf32>
    %cst_18 = arith.constant 5.000000e-01 : f32
    %48 = vector.broadcast %cst_18 : f32 to vector<16x256xf32>
    %49 = arith.mulf %48, %47 : vector<16x256xf32>
    %50 = arith.mulf %41, %49 : vector<16x256xf32>
    %c0_19 = arith.constant 0 : index
    %c0_20 = arith.constant 0 : index
    %c0_21 = arith.constant 0 : index
    %51 = vector.load %arg6[%c0_19, %c0_20, %c0_21] : memref<3x32x16xbf16, #tpu.memory_space<vmem>>, vector<1x32x16xbf16>
    %52 = vector.shape_cast %51 : vector<1x32x16xbf16> to vector<32x16xbf16>
    %53 = arith.truncf %50 : vector<16x256xf32> to vector<16x256xbf16>
    %cst_22 = arith.constant dense<0.000000e+00> : vector<32x256xf32>
    %54 = tpu.matmul %52, %53, %cst_22 {dimension_numbers = #tpu.dot_dimension_numbers<[1], [0], [0], [1], [0, 0, 1, 1], [], []>} : vector<32x16xbf16>, vector<16x256xbf16>, vector<32x256xf32> -> vector<32x256xf32>
    %c0_23 = arith.constant 0 : index
    %c0_24 = arith.constant 0 : index
    %c0_25 = arith.constant 0 : index
    %55 = vector.load %arg7[%c0_23, %c0_24, %c0_25] : memref<3x32x1xf32, #tpu.memory_space<vmem>>, vector<1x32x1xf32>
    %56 = vector.shape_cast %55 : vector<1x32x1xf32> to vector<32x1xf32>
    %57 = vector.broadcast %56 : vector<32x1xf32> to vector<32x256xf32>
    %58 = arith.addf %54, %57 : vector<32x256xf32>
    %59 = vector.extract_strided_slice %58 {offsets = [0, 0], sizes = [16, 256], strides = [1, 1]} : vector<32x256xf32> to vector<16x256xf32>
    %60 = arith.addf %23, %59 : vector<16x256xf32>
    %61 = vector.extract_strided_slice %58 {offsets = [16, 0], sizes = [16, 256], strides = [1, 1]} : vector<32x256xf32> to vector<16x256xf32>
    %c1 = arith.constant 1 : index
    %c0_26 = arith.constant 0 : index
    %c0_27 = arith.constant 0 : index
    %62 = vector.load %arg4[%c1, %c0_26, %c0_27] : memref<3x64x16xbf16, #tpu.memory_space<vmem>>, vector<1x64x16xbf16>
    %63 = vector.shape_cast %62 : vector<1x64x16xbf16> to vector<64x16xbf16>
    %64 = arith.truncf %60 : vector<16x256xf32> to vector<16x256xbf16>
    %cst_28 = arith.constant dense<0.000000e+00> : vector<64x256xf32>
    %65 = tpu.matmul %63, %64, %cst_28 {dimension_numbers = #tpu.dot_dimension_numbers<[1], [0], [0], [1], [0, 0, 1, 1], [], []>} : vector<64x16xbf16>, vector<16x256xbf16>, vector<64x256xf32> -> vector<64x256xf32>
    %66 = vector.extract_strided_slice %65 {offsets = [0, 0], sizes = [32, 256], strides = [1, 1]} : vector<64x256xf32> to vector<32x256xf32>
    %67 = vector.extract_strided_slice %65 {offsets = [32, 0], sizes = [32, 256], strides = [1, 1]} : vector<64x256xf32> to vector<32x256xf32>
    %c4_i32_29 = arith.constant 4 : i32
    %68 = tpu.dynamic_rotate %67 by %c4_i32_29 dim 1 : vector<32x256xf32>, i32 -> vector<32x256xf32>
    %cst_30 = arith.constant 0.000000e+00 : f32
    %69 = vector.shape_cast %8 : vector<1x256xi1> to vector<1x256xi1>
    %70 = vector.broadcast %69 : vector<1x256xi1> to vector<32x256xi1>
    %71 = vector.broadcast %cst_30 : f32 to vector<32x256xf32>
    %72 = arith.select %70, %68, %71 : vector<32x256xi1>, vector<32x256xf32>
    %73 = arith.addf %66, %72 : vector<32x256xf32>
    %c1_31 = arith.constant 1 : index
    %c0_32 = arith.constant 0 : index
    %c0_33 = arith.constant 0 : index
    %74 = vector.load %arg5[%c1_31, %c0_32, %c0_33] : memref<3x32x1xf32, #tpu.memory_space<vmem>>, vector<1x32x1xf32>
    %75 = vector.shape_cast %74 : vector<1x32x1xf32> to vector<32x1xf32>
    %76 = vector.broadcast %75 : vector<32x1xf32> to vector<32x256xf32>
    %77 = arith.addf %73, %76 : vector<32x256xf32>
    %78 = vector.extract_strided_slice %77 {offsets = [0, 0], sizes = [16, 256], strides = [1, 1]} : vector<32x256xf32> to vector<16x256xf32>
    %79 = math.tanh %78 : vector<16x256xf32>
    %80 = vector.extract_strided_slice %77 {offsets = [16, 0], sizes = [16, 256], strides = [1, 1]} : vector<32x256xf32> to vector<16x256xf32>
    %cst_34 = arith.constant 5.000000e-01 : f32
    %81 = vector.broadcast %cst_34 : f32 to vector<16x256xf32>
    %82 = arith.mulf %81, %80 : vector<16x256xf32>
    %83 = math.tanh %82 : vector<16x256xf32>
    %cst_35 = arith.constant 1.000000e+00 : f32
    %84 = vector.broadcast %cst_35 : f32 to vector<16x256xf32>
    %85 = arith.addf %84, %83 : vector<16x256xf32>
    %cst_36 = arith.constant 5.000000e-01 : f32
    %86 = vector.broadcast %cst_36 : f32 to vector<16x256xf32>
    %87 = arith.mulf %86, %85 : vector<16x256xf32>
    %88 = arith.mulf %79, %87 : vector<16x256xf32>
    %c1_37 = arith.constant 1 : index
    %c0_38 = arith.constant 0 : index
    %c0_39 = arith.constant 0 : index
    %89 = vector.load %arg6[%c1_37, %c0_38, %c0_39] : memref<3x32x16xbf16, #tpu.memory_space<vmem>>, vector<1x32x16xbf16>
    %90 = vector.shape_cast %89 : vector<1x32x16xbf16> to vector<32x16xbf16>
    %91 = arith.truncf %88 : vector<16x256xf32> to vector<16x256xbf16>
    %cst_40 = arith.constant dense<0.000000e+00> : vector<32x256xf32>
    %92 = tpu.matmul %90, %91, %cst_40 {dimension_numbers = #tpu.dot_dimension_numbers<[1], [0], [0], [1], [0, 0, 1, 1], [], []>} : vector<32x16xbf16>, vector<16x256xbf16>, vector<32x256xf32> -> vector<32x256xf32>
    %c1_41 = arith.constant 1 : index
    %c0_42 = arith.constant 0 : index
    %c0_43 = arith.constant 0 : index
    %93 = vector.load %arg7[%c1_41, %c0_42, %c0_43] : memref<3x32x1xf32, #tpu.memory_space<vmem>>, vector<1x32x1xf32>
    %94 = vector.shape_cast %93 : vector<1x32x1xf32> to vector<32x1xf32>
    %95 = vector.broadcast %94 : vector<32x1xf32> to vector<32x256xf32>
    %96 = arith.addf %92, %95 : vector<32x256xf32>
    %97 = vector.extract_strided_slice %96 {offsets = [0, 0], sizes = [16, 256], strides = [1, 1]} : vector<32x256xf32> to vector<16x256xf32>
    %98 = arith.addf %60, %97 : vector<16x256xf32>
    %99 = vector.extract_strided_slice %96 {offsets = [16, 0], sizes = [16, 256], strides = [1, 1]} : vector<32x256xf32> to vector<16x256xf32>
    %100 = arith.addf %61, %99 : vector<16x256xf32>
    %c2 = arith.constant 2 : index
    %c0_44 = arith.constant 0 : index
    %c0_45 = arith.constant 0 : index
    %101 = vector.load %arg4[%c2, %c0_44, %c0_45] : memref<3x64x16xbf16, #tpu.memory_space<vmem>>, vector<1x64x16xbf16>
    %102 = vector.shape_cast %101 : vector<1x64x16xbf16> to vector<64x16xbf16>
    %103 = arith.truncf %98 : vector<16x256xf32> to vector<16x256xbf16>
    %cst_46 = arith.constant dense<0.000000e+00> : vector<64x256xf32>
    %104 = tpu.matmul %102, %103, %cst_46 {dimension_numbers = #tpu.dot_dimension_numbers<[1], [0], [0], [1], [0, 0, 1, 1], [], []>} : vector<64x16xbf16>, vector<16x256xbf16>, vector<64x256xf32> -> vector<64x256xf32>
    %105 = vector.extract_strided_slice %104 {offsets = [0, 0], sizes = [32, 256], strides = [1, 1]} : vector<64x256xf32> to vector<32x256xf32>
    %106 = vector.extract_strided_slice %104 {offsets = [32, 0], sizes = [32, 256], strides = [1, 1]} : vector<64x256xf32> to vector<32x256xf32>
    %c8_i32_47 = arith.constant 8 : i32
    %107 = tpu.dynamic_rotate %106 by %c8_i32_47 dim 1 : vector<32x256xf32>, i32 -> vector<32x256xf32>
    %cst_48 = arith.constant 0.000000e+00 : f32
    %108 = vector.shape_cast %10 : vector<1x256xi1> to vector<1x256xi1>
    %109 = vector.broadcast %108 : vector<1x256xi1> to vector<32x256xi1>
    %110 = vector.broadcast %cst_48 : f32 to vector<32x256xf32>
    %111 = arith.select %109, %107, %110 : vector<32x256xi1>, vector<32x256xf32>
    %112 = arith.addf %105, %111 : vector<32x256xf32>
    %c2_49 = arith.constant 2 : index
    %c0_50 = arith.constant 0 : index
    %c0_51 = arith.constant 0 : index
    %113 = vector.load %arg5[%c2_49, %c0_50, %c0_51] : memref<3x32x1xf32, #tpu.memory_space<vmem>>, vector<1x32x1xf32>
    %114 = vector.shape_cast %113 : vector<1x32x1xf32> to vector<32x1xf32>
    %115 = vector.broadcast %114 : vector<32x1xf32> to vector<32x256xf32>
    %116 = arith.addf %112, %115 : vector<32x256xf32>
    %117 = vector.extract_strided_slice %116 {offsets = [0, 0], sizes = [16, 256], strides = [1, 1]} : vector<32x256xf32> to vector<16x256xf32>
    %118 = math.tanh %117 : vector<16x256xf32>
    %119 = vector.extract_strided_slice %116 {offsets = [16, 0], sizes = [16, 256], strides = [1, 1]} : vector<32x256xf32> to vector<16x256xf32>
    %cst_52 = arith.constant 5.000000e-01 : f32
    %120 = vector.broadcast %cst_52 : f32 to vector<16x256xf32>
    %121 = arith.mulf %120, %119 : vector<16x256xf32>
    %122 = math.tanh %121 : vector<16x256xf32>
    %cst_53 = arith.constant 1.000000e+00 : f32
    %123 = vector.broadcast %cst_53 : f32 to vector<16x256xf32>
    %124 = arith.addf %123, %122 : vector<16x256xf32>
    %cst_54 = arith.constant 5.000000e-01 : f32
    %125 = vector.broadcast %cst_54 : f32 to vector<16x256xf32>
    %126 = arith.mulf %125, %124 : vector<16x256xf32>
    %127 = arith.mulf %118, %126 : vector<16x256xf32>
    %c2_55 = arith.constant 2 : index
    %c0_56 = arith.constant 0 : index
    %c0_57 = arith.constant 0 : index
    %128 = vector.load %arg6[%c2_55, %c0_56, %c0_57] : memref<3x32x16xbf16, #tpu.memory_space<vmem>>, vector<1x32x16xbf16>
    %129 = vector.shape_cast %128 : vector<1x32x16xbf16> to vector<32x16xbf16>
    %130 = arith.truncf %127 : vector<16x256xf32> to vector<16x256xbf16>
    %cst_58 = arith.constant dense<0.000000e+00> : vector<32x256xf32>
    %131 = tpu.matmul %129, %130, %cst_58 {dimension_numbers = #tpu.dot_dimension_numbers<[1], [0], [0], [1], [0, 0, 1, 1], [], []>} : vector<32x16xbf16>, vector<16x256xbf16>, vector<32x256xf32> -> vector<32x256xf32>
    %c2_59 = arith.constant 2 : index
    %c0_60 = arith.constant 0 : index
    %c0_61 = arith.constant 0 : index
    %132 = vector.load %arg7[%c2_59, %c0_60, %c0_61] : memref<3x32x1xf32, #tpu.memory_space<vmem>>, vector<1x32x1xf32>
    %133 = vector.shape_cast %132 : vector<1x32x1xf32> to vector<32x1xf32>
    %134 = vector.broadcast %133 : vector<32x1xf32> to vector<32x256xf32>
    %135 = arith.addf %131, %134 : vector<32x256xf32>
    %136 = vector.extract_strided_slice %135 {offsets = [16, 0], sizes = [16, 256], strides = [1, 1]} : vector<32x256xf32> to vector<16x256xf32>
    %137 = arith.addf %100, %136 : vector<16x256xf32>
    %cst_62 = arith.constant 0.000000e+00 : f32
    %138 = vector.broadcast %cst_62 : f32 to vector<16x256xf32>
    %139 = arith.maximumf %137, %138 : vector<16x256xf32>
    %c0_63 = arith.constant 0 : index
    %c0_64 = arith.constant 0 : index
    %140 = vector.load %arg8[%c0_63, %c0_64] : memref<16x16xbf16, #tpu.memory_space<vmem>>, vector<16x16xbf16>
    %141 = arith.truncf %139 : vector<16x256xf32> to vector<16x256xbf16>
    %cst_65 = arith.constant dense<0.000000e+00> : vector<16x256xf32>
    %142 = tpu.matmul %140, %141, %cst_65 {dimension_numbers = #tpu.dot_dimension_numbers<[1], [0], [0], [1], [0, 0, 1, 1], [], []>} : vector<16x16xbf16>, vector<16x256xbf16>, vector<16x256xf32> -> vector<16x256xf32>
    %c0_66 = arith.constant 0 : index
    %c0_67 = arith.constant 0 : index
    %143 = vector.load %arg9[%c0_66, %c0_67] : memref<16x1xf32, #tpu.memory_space<vmem>>, vector<16x1xf32>
    %144 = vector.broadcast %143 : vector<16x1xf32> to vector<16x256xf32>
    %145 = arith.addf %142, %144 : vector<16x256xf32>
    %cst_68 = arith.constant 0.000000e+00 : f32
    %146 = vector.broadcast %cst_68 : f32 to vector<16x256xf32>
    %147 = arith.maximumf %145, %146 : vector<16x256xf32>
    %c32_i32 = arith.constant 32 : i32
    %148 = vector.broadcast %c32_i32 : i32 to vector<1x128xi32>
    %149 = arith.cmpi slt, %1, %148 : vector<1x128xi32>
    %150 = vector.extract_strided_slice %147 {offsets = [0, 0], sizes = [16, 128], strides = [1, 1]} : vector<16x256xf32> to vector<16x128xf32>
    %cst_69 = arith.constant 0.000000e+00 : f32
    %151 = vector.shape_cast %149 : vector<1x128xi1> to vector<1x128xi1>
    %152 = vector.broadcast %151 : vector<1x128xi1> to vector<16x128xi1>
    %153 = vector.broadcast %cst_69 : f32 to vector<16x128xf32>
    %154 = arith.select %152, %150, %153 : vector<16x128xi1>, vector<16x128xf32>
    %cst_70 = arith.constant dense<0.000000e+00> : vector<16xf32>
    %155 = vector.multi_reduction <add>, %154, %cst_70 [1] : vector<16x128xf32> to vector<16xf32>
    %156 = vector.shape_cast %155 : vector<16xf32> to vector<16x1xf32>
    %cst_71 = arith.constant 3.125000e-02 : f32
    %157 = vector.broadcast %cst_71 : f32 to vector<16x1xf32>
    %158 = arith.mulf %156, %157 : vector<16x1xf32>
    %cst_72 = arith.constant 0xFF800000 : f32
    %159 = vector.shape_cast %149 : vector<1x128xi1> to vector<1x128xi1>
    %160 = vector.broadcast %159 : vector<1x128xi1> to vector<16x128xi1>
    %161 = vector.broadcast %cst_72 : f32 to vector<16x128xf32>
    %162 = arith.select %160, %150, %161 : vector<16x128xi1>, vector<16x128xf32>
    %cst_73 = arith.constant dense<0xFF800000> : vector<16xf32>
    %163 = vector.multi_reduction <maximumf>, %162, %cst_73 [1] : vector<16x128xf32> to vector<16xf32>
    %164 = vector.shape_cast %163 : vector<16xf32> to vector<16x1xf32>
    %165 = vector.extract_strided_slice %147 {offsets = [0, 128], sizes = [16, 128], strides = [1, 1]} : vector<16x256xf32> to vector<16x128xf32>
    %cst_74 = arith.constant 0.000000e+00 : f32
    %166 = vector.shape_cast %149 : vector<1x128xi1> to vector<1x128xi1>
    %167 = vector.broadcast %166 : vector<1x128xi1> to vector<16x128xi1>
    %168 = vector.broadcast %cst_74 : f32 to vector<16x128xf32>
    %169 = arith.select %167, %165, %168 : vector<16x128xi1>, vector<16x128xf32>
    %cst_75 = arith.constant dense<0.000000e+00> : vector<16xf32>
    %170 = vector.multi_reduction <add>, %169, %cst_75 [1] : vector<16x128xf32> to vector<16xf32>
    %171 = vector.shape_cast %170 : vector<16xf32> to vector<16x1xf32>
    %cst_76 = arith.constant 3.125000e-02 : f32
    %172 = vector.broadcast %cst_76 : f32 to vector<16x1xf32>
    %173 = arith.mulf %171, %172 : vector<16x1xf32>
    %cst_77 = arith.constant 0xFF800000 : f32
    %174 = vector.shape_cast %149 : vector<1x128xi1> to vector<1x128xi1>
    %175 = vector.broadcast %174 : vector<1x128xi1> to vector<16x128xi1>
    %176 = vector.broadcast %cst_77 : f32 to vector<16x128xf32>
    %177 = arith.select %175, %165, %176 : vector<16x128xi1>, vector<16x128xf32>
    %cst_78 = arith.constant dense<0xFF800000> : vector<16xf32>
    %178 = vector.multi_reduction <maximumf>, %177, %cst_78 [1] : vector<16x128xf32> to vector<16xf32>
    %179 = vector.shape_cast %178 : vector<16xf32> to vector<16x1xf32>
    %180 = tpu.concatenate %158, %173 in 1 : vector<16x1xf32>, vector<16x1xf32> -> vector<16x2xf32>
    %181 = tpu.concatenate %164, %179 in 1 : vector<16x1xf32>, vector<16x1xf32> -> vector<16x2xf32>
    %182 = tpu.concatenate %180, %181 in 0 : vector<16x2xf32>, vector<16x2xf32> -> vector<32x2xf32>
    %183 = vector.shape_cast %182 : vector<32x2xf32> to vector<1x32x2xf32>
    %c0_79 = arith.constant 0 : index
    %c0_80 = arith.constant 0 : index
    %c0_81 = arith.constant 0 : index
    %184 = vector.load %arg13[%c0_79, %c0_80, %c0_81] : memref<1x32x2xf32, #tpu.memory_space<vmem>>, vector<1x32x2xf32>
    tpu.vector_store %arg13[%c0_79, %c0_80, %c0_81], %183 {strides = array<i32>} : memref<1x32x2xf32, #tpu.memory_space<vmem>>, vector<1x32x2xf32>,
    %c0_82 = arith.constant 0 : index
    %c0_83 = arith.constant 0 : index
    %185 = vector.load %arg10[%c0_82, %c0_83] : memref<32x16xbf16, #tpu.memory_space<vmem>>, vector<32x16xbf16>
    %186 = arith.truncf %147 : vector<16x256xf32> to vector<16x256xbf16>
    %cst_84 = arith.constant dense<0.000000e+00> : vector<32x256xf32>
    %187 = tpu.matmul %185, %186, %cst_84 {dimension_numbers = #tpu.dot_dimension_numbers<[1], [0], [0], [1], [0, 0, 1, 1], [], []>} : vector<32x16xbf16>, vector<16x256xbf16>, vector<32x256xf32> -> vector<32x256xf32>
    %c0_85 = arith.constant 0 : index
    %c0_86 = arith.constant 0 : index
    %188 = vector.load %arg11[%c0_85, %c0_86] : memref<32x1xf32, #tpu.memory_space<vmem>>, vector<32x1xf32>
    %189 = vector.broadcast %188 : vector<32x1xf32> to vector<32x256xf32>
    %190 = arith.addf %187, %189 : vector<32x256xf32>
    %191 = arith.truncf %190 : vector<32x256xf32> to vector<32x256xbf16>
    %c0_87 = arith.constant 0 : index
    %c0_88 = arith.constant 0 : index
    %192 = vector.load %arg12[%c0_87, %c0_88] : memref<32x256xbf16, #tpu.memory_space<vmem>>, vector<32x256xbf16>
    tpu.vector_store %arg12[%c0_87, %c0_88], %191 {strides = array<i32>} : memref<32x256xbf16, #tpu.memory_space<vmem>>, vector<32x256xbf16>,
    return
  }
  func.func @transform_0(%arg0: i32) -> (i32, i32) {
    %c0_i32 = arith.constant 0 : i32
    %c0_i32_0 = arith.constant 0 : i32
    return %c0_i32, %arg0 : i32, i32
  }
  func.func @transform_1(%arg0: i32) -> (i32, i32) {
    %c0_i32 = arith.constant 0 : i32
    %c0_i32_0 = arith.constant 0 : i32
    %c0_i32_1 = arith.constant 0 : i32
    return %c0_i32, %c0_i32_0 : i32, i32
  }
  func.func @transform_2(%arg0: i32) -> (i32, i32) {
    %c0_i32 = arith.constant 0 : i32
    %c0_i32_0 = arith.constant 0 : i32
    %c0_i32_1 = arith.constant 0 : i32
    return %c0_i32, %c0_i32_0 : i32, i32
  }
  func.func @transform_3(%arg0: i32) -> (i32, i32, i32) {
    %c0_i32 = arith.constant 0 : i32
    %c0_i32_0 = arith.constant 0 : i32
    %c0_i32_1 = arith.constant 0 : i32
    %c0_i32_2 = arith.constant 0 : i32
    return %c0_i32, %c0_i32_0, %c0_i32_1 : i32, i32, i32
  }
  func.func @transform_4(%arg0: i32) -> (i32, i32, i32) {
    %c0_i32 = arith.constant 0 : i32
    %c0_i32_0 = arith.constant 0 : i32
    %c0_i32_1 = arith.constant 0 : i32
    %c0_i32_2 = arith.constant 0 : i32
    return %c0_i32, %c0_i32_0, %c0_i32_1 : i32, i32, i32
  }
  func.func @transform_5(%arg0: i32) -> (i32, i32, i32) {
    %c0_i32 = arith.constant 0 : i32
    %c0_i32_0 = arith.constant 0 : i32
    %c0_i32_1 = arith.constant 0 : i32
    %c0_i32_2 = arith.constant 0 : i32
    return %c0_i32, %c0_i32_0, %c0_i32_1 : i32, i32, i32
  }
  func.func @transform_6(%arg0: i32) -> (i32, i32, i32) {
    %c0_i32 = arith.constant 0 : i32
    %c0_i32_0 = arith.constant 0 : i32
    %c0_i32_1 = arith.constant 0 : i32
    %c0_i32_2 = arith.constant 0 : i32
    return %c0_i32, %c0_i32_0, %c0_i32_1 : i32, i32, i32
  }
  func.func @transform_7(%arg0: i32) -> (i32, i32) {
    %c0_i32 = arith.constant 0 : i32
    %c0_i32_0 = arith.constant 0 : i32
    %c0_i32_1 = arith.constant 0 : i32
    return %c0_i32, %c0_i32_0 : i32, i32
  }
  func.func @transform_8(%arg0: i32) -> (i32, i32) {
    %c0_i32 = arith.constant 0 : i32
    %c0_i32_0 = arith.constant 0 : i32
    %c0_i32_1 = arith.constant 0 : i32
    return %c0_i32, %c0_i32_0 : i32, i32
  }
  func.func @transform_9(%arg0: i32) -> (i32, i32) {
    %c0_i32 = arith.constant 0 : i32
    %c0_i32_0 = arith.constant 0 : i32
    %c0_i32_1 = arith.constant 0 : i32
    return %c0_i32, %c0_i32_0 : i32, i32
  }
  func.func @transform_10(%arg0: i32) -> (i32, i32) {
    %c0_i32 = arith.constant 0 : i32
    %c0_i32_0 = arith.constant 0 : i32
    %c0_i32_1 = arith.constant 0 : i32
    return %c0_i32, %c0_i32_0 : i32, i32
  }
  func.func @transform_11(%arg0: i32) -> (i32, i32) {
    %c0_i32 = arith.constant 0 : i32
    %c0_i32_0 = arith.constant 0 : i32
    return %c0_i32, %arg0 : i32, i32
  }
  func.func @transform_12(%arg0: i32) -> (i32, i32, i32) {
    %c0_i32 = arith.constant 0 : i32
    %c0_i32_0 = arith.constant 0 : i32
    %c0_i32_1 = arith.constant 0 : i32
    return %arg0, %c0_i32, %c0_i32_0 : i32, i32, i32
  }
}

</mosaic_0001>

<bundles_post_ra>
// kernel: tpu_custom_call.1
= control target key start
LH: loop header
LB: loop body
LE: loop exit
PB: predicated region body
PF: predicated region fallthrough
CT: control target
= control target key end

     0   :  { %vm75_vm0 = vcmask 1043456   ;;  %v1634_v3 = vmov 0   ;;  %vm68_vm1 = vcmask 64512   ;;  %s2174_s0 = inlined_call_operand.vmem [shape: bf16[8,256], index: 0, kind: input, shape index: {}]   ;;  %s2175_s1 = inlined_call_operand.vmem [shape: bf16[32,8], index: 1, kind: input, shape index: {}]   ;;  %s2176_s2 = inlined_call_operand.vmem [shape: f32[16,1], index: 2, kind: input, shape index: {}]   ;;  %s2177_s3 = inlined_call_operand.vmem [shape: bf16[3,64,16], index: 3, kind: input, shape index: {}]   ;;  %s2178_s4 = inlined_call_operand.vmem [shape: f32[3,32,1], index: 4, kind: input, shape index: {}]   ;;  %s2179_s5 = inlined_call_operand.vmem [shape: bf16[3,32,16], index: 5, kind: input, shape index: {}]   ;;  %s2180_s6 = inlined_call_operand.vmem [shape: f32[3,32,1], index: 6, kind: input, shape index: {}]   ;;  %s2181_s7 = inlined_call_operand.vmem [shape: bf16[16,16], index: 7, kind: input, shape index: {}]   ;;  %s2182_s8 = inlined_call_operand.vmem [shape: f32[16,1], index: 8, kind: input, shape index: {}]   ;;  %s2183_s9 = inlined_call_operand.vmem [shape: bf16[32,16], index: 9, kind: input, shape index: {}]   ;;  %s2184_s10 = inlined_call_operand.vmem [shape: f32[32,1], index: 10, kind: input, shape index: {}]   ;;  %s2185_s11 = inlined_call_operand.hbm [shape: bf16[32,256], index: 11, kind: output, shape index: {0}]   ;;  %s2186_s12 = inlined_call_operand.vmem [shape: f32[1,32,2], index: 12, kind: output, shape index: {1}]  }
   0x1   :  { %v42_v0 = vld [vmem:[%s2174_s0] sm:$0xff]  ;;  %114 = vmatprep.mubr.bf16.mxu0 %v1634_v3  ;;  %1535 = vset.pattern.permute.xlu0 %v1634_v3  ;;  %v163_v7 = vld [vmem:[%s2176_s2 + $0x8] sm:$0xff] }
   0x2   :  { %v1414_v1 = vcombine.high %v42_v0, %v42_v0  ;;  %v1413_v2 = vcombine.low %v42_v0, %v42_v0  ;;  %v1539_v4 = vld [vmem:[%s2175_s1] sm:$0xff]   ;;  %253 = vmatprep.mubr.bf16.mxu1 %v1634_v3  ;;  %1536 = vset.pattern.permute.xlu1 %v1634_v3  ;;  %v1540_v8 = vld [vmem:[%s2175_s1 + $0x8] sm:$0xff]  }
   0x3   :  { %v162_v5 = vld [vmem:[%s2176_s2] sm:$0xff] }
   0x4   :  { %1415 = vmatprep.subr.msk.bf16.mxu0 %vm75_vm0, %v1414_v1  ;;  %v77_v6 = vsel %vm75_vm0, %v1413_v2, 0  ;;  %166 = vperm.xlu0 %1535, %v162_v5  }
   0x5   :  { %83 = vmatpush1.bf16.msra.mxu0 %v77_v6 }
   0x8   :  { %1416 = vmatmul.mubr.msk.bf16.vlgmr.msra.gmra.mrb[0].mxu0 %vm68_vm1, %v1539_v4  ;;  %171 = vperm.xlu0 %1535, %v163_v7  }
   0x9   :  { %124 = vmatprep.mubr.bf16.mxu0 %v1634_v3 }
  0x10   :  { %1417 = vmatmul.mubr.msk.bf16.gmra.mrb[4].mxu0 %vm68_vm1, %v1540_v8 }
  0x11   :  { %475 = vmatprep.mubr.bf16.mxu0 %v1634_v3 }
  0x12   :  { %18 = vsyncpa [#allocation3], 0  ;;  %s1635_s30 = smov 1   ;;  %v343_v17 = vld [vmem:[%s2178_s4 + $0x10] sm:$0xff]  ;;  %v341_v18 = vld [vmem:[%s2178_s4] sm:$0xff]  ;;  %v43_v19 = vlaneseq  ;;  %vm208_vm5 = vcmask 130048  }
  0x13   :  { %v1541_v49 = vld [vmem:[%s2177_s3] sm:$0xff]   ;;  %v1542_v50 = vld [vmem:[%s2177_s3 + $0x8] sm:$0xff]   ;;  %v1543_v51 = vld [vmem:[%s2177_s3 + $0x10] sm:$0xff]   ;;  %s1636_s0 = smov 2   ;;  %vm1254_vm0 = vcmask 7168   ;;  %vm1259_vm1 = vcmask 15360  }
  0x14   :  { %v1733_v21 = vand.u32 127, %v43_v19  ;;  %v150_v22 = vshrl.u32 %v43_v19, 7  ;;  %v1544_v52 = vld [vmem:[%s2177_s3 + $0x18] sm:$0xff]   ;;  %v342_v54 = vld [vmem:[%s2178_s4 + $0x8] sm:$0xff]  ;;  %v403_v8 = vld [vmem:[%s2180_s6] sm:$0xff] }
  0x15   :  { %v344_v53 = vld [vmem:[%s2178_s4 + $0x18] sm:$0xff] }
  0x16   :  { %vm45_vm2 = vcmp.ge.s32.totalorder %v1733_v21, 1  ;;  %v1736_v24 = vsub.s32 0, %v150_v22  ;;  %vm143_vm3 = vcmp.lt.s32.totalorder %v1733_v21, 1  ;;  %vm46_vm6 = vcmp.ge.s32.totalorder %v1733_v21, 2 }
  0x17   :  { %v148_v25 = vsel %vm45_vm2, 1, %v1634_v3  ;;  %vm310_vm7 = vcmp.lt.s32.totalorder %v1733_v21, 2  ;;  %vm47_vm9 = vcmp.ge.s32.totalorder %v1733_v21, 4  ;;  %vm632_vm10 = vcmp.lt.s32.totalorder %v1733_v21, 4 }
  0x18   :  { %v152_v26 = vrot.slane %v148_v25, %v1736_v24  ;;  %vm48_vm12 = vcmp.ge.s32.totalorder %v1733_v21, 8  ;;  %vm961_vm13 = vcmp.lt.s32.totalorder %v1733_v21, 8  ;;  %vm1223_vm15 = vcmp.lt.s32.totalorder %v1733_v21, 32 }
  0x1a   :  { %vm153_vm4 = vcmp.eq.s32.totalorder %v152_v26, 1 }
  0x83   :  { %v167_v20 = vpop.permute.xlu0 %166 }
  0x87   :  { %v172_v23 = vpop.permute.xlu0 %171 }
  0xdb   :  { %v116_v9 = vpop.f32.mrb[0].mxu0 }
  0xdc   :  { %v118_v10 = vpop.f32.mrb[1].mxu0 }
  0xdd   :  { %v120_v11 = vpop.f32.mrb[2].mxu0 }
  0xde   :  { %v122_v12 = vpop.f32.mrb[3].mxu0 }
  0xe3   :  { %v126_v13 = vpop.f32.mrb[4].mxu0 }
  0xe4   :  { %135 = vrot.lane.b32.xlu1 %v126_v13, %s1635_s30  ;;  %v128_v14 = vpop.f32.mrb[5].mxu0  ;;  %v1447_v13 = vld [vmem:[%s2178_s4 + $0x28] sm:$0xff] }
  0xe5   :  { %139 = vrot.lane.b32.xlu0 %v128_v14, %s1635_s30  ;;  %v130_v15 = vpop.f32.mrb[6].mxu0 }
  0xe6   :  { %v132_v16 = vpop.f32.mrb[7].mxu0 }
  0xe8   :  { %137 = vrot.lane.b32.xlu1 %v130_v15, %s1635_s30 }
  0xe9   :  { %357 = vperm.xlu0 %1535, %v343_v17   ;;  %v319_v17 = vsel %vm46_vm6, 1, %v1634_v3 }
  0xea   :  { %v323_v19 = vrot.slane %v319_v17, %v1736_v24 }
  0xec   :  { %141 = vrot.lane.b32.xlu1 %v132_v16, %s1635_s30  ;;  %vm1809_vm8 = vcmp.eq.s32.totalorder %v323_v19, 1  ;;  %s1637_s30 = smov 4  }
  0xed   :  { %347 = vperm.xlu0 %1535, %v341_v18  }
  0xf0   :  { %362 = vperm.xlu1 %1536, %v344_v53  }
  0xf4   :  { %352 = vperm.xlu1 %1536, %v342_v54  }
 0x156   :  { %v136_v27 = vpop.permute.xlu1 %135 }
 0x157   :  { %v140_v28 = vpop.permute.xlu0 %139 }
 0x158   :  { %v144_v29 = vsel %vm143_vm3, %v136_v27, %v140_v28  ;;  %v146_v30 = vsel %vm143_vm3, %v140_v28, %v136_v27 }
 0x159   :  { %v154_v32 = vsel %vm153_vm4, %v146_v30, 0.0  ;;  %v155_v33 = vsel %vm153_vm4, %v144_v29, 0.0 }
 0x15a   :  { %v138_v31 = vpop.permute.xlu1 %137  ;;  %v158_v35 = vadd.f32 %v154_v32, %v116_v9  ;;  %v159_v36 = vadd.f32 %v155_v33, %v118_v10  ;;  %v404_v9 = vld [vmem:[%s2180_s6 + $0x8] sm:$0xff]  ;;  %v1448_v10 = vld [vmem:[%s2178_s4 + $0x30] sm:$0xff] }
 0x15c   :  { %v1741_v43 = vadd.f32 %v167_v20, %v159_v36  ;;  %v1745_v45 = vadd.f32 %v167_v20, %v158_v35 }
 0x15e   :  { %v142_v34 = vpop.permute.xlu1 %141 }
 0x15f   :  { %v145_v37 = vsel %vm143_vm3, %v138_v31, %v142_v34  ;;  %v147_v38 = vsel %vm143_vm3, %v142_v34, %v138_v31 }
 0x160   :  { %v156_v39 = vsel %vm153_vm4, %v147_v38, 0.0  ;;  %v157_v40 = vsel %vm153_vm4, %v145_v37, 0.0 }
 0x161   :  { %v160_v41 = vadd.f32 %v156_v39, %v120_v11  ;;  %v161_v42 = vadd.f32 %v157_v40, %v122_v12  ;;  %v1449_v11 = vld [vmem:[%s2178_s4 + $0x38] sm:$0xff]  ;;  %v1446_v12 = vld [vmem:[%s2178_s4 + $0x20] sm:$0xff] }
 0x163   :  { %v1743_v44 = vadd.f32 %v172_v23, %v161_v42  ;;  %v1747_v46 = vadd.f32 %v172_v23, %v160_v41 }
 0x165   :  { %v187_v47 = vpack.c.bf16 %v1743_v44, %v1741_v43  ;;  %v186_v48 = vpack.c.bf16 %v1747_v46, %v1745_v45 }
 0x167   :  { %221 = vmatprep.subr.bf16.mxu1 %v187_v47 }
 0x168   :  { %222 = vmatpush1.bf16.msra.mxu1 %v186_v48  ;;  %v358_v14 = vpop.permute.xlu0 %357 }
 0x16b   :  { %1422 = vmatmul.mubr.msk.bf16.vlgmr.msra.gmra.mrb[0].mxu1 %vm208_vm5, %v1541_v49 }
 0x16c   :  { %263 = vmatprep.mubr.bf16.mxu1 %v1634_v3  ;;  %v348_v16 = vpop.permute.xlu0 %347 }
 0x16f   :  { %v363_v15 = vpop.permute.xlu1 %362 }
 0x173   :  { %1423 = vmatmul.mubr.msk.bf16.gmra.mrb[4].mxu1 %vm208_vm5, %v1542_v50  ;;  %v353_v18 = vpop.permute.xlu1 %352 }
 0x174   :  { %273 = vmatprep.mubr.bf16.mxu1 %v1634_v3 }
 0x17b   :  { %1424 = vmatmul.mubr.msk.bf16.gmra.mrb[8].mxu1 %vm208_vm5, %v1543_v51 }
 0x17c   :  { %283 = vmatprep.mubr.bf16.mxu1 %v1634_v3 }
 0x183   :  { %1425 = vmatmul.mubr.msk.bf16.gmra.mrb[12].mxu1 %vm208_vm5, %v1544_v52 }
 0x184   :  { %904 = vmatprep.mubr.bf16.mxu1 %v1634_v3 }
 0x23e   :  { %v1779_v55 = vpop.f32.mrb[0].mxu1 }
 0x23f   :  { %v1781_v56 = vpop.f32.mrb[1].mxu1 }
 0x240   :  { %v1783_v57 = vpop.f32.mrb[2].mxu1 }
 0x241   :  { %v1785_v58 = vpop.f32.mrb[3].mxu1 }
 0x246   :  { %v265_v59 = vpop.f32.mrb[4].mxu1 }
 0x247   :  { %v267_v60 = vpop.f32.mrb[5].mxu1 }
 0x248   :  { %v269_v61 = vpop.f32.mrb[6].mxu1 }
 0x249   :  { %v271_v62 = vpop.f32.mrb[7].mxu1 }
 0x24e   :  { %v275_v63 = vpop.f32.mrb[8].mxu1 }
 0x24f   :  { %v277_v0 = vpop.f32.mrb[9].mxu1 }
 0x250   :  { %v279_v1 = vpop.f32.mrb[10].mxu1 }
 0x251   :  { %v281_v2 = vpop.f32.mrb[11].mxu1 }
 0x256   :  { %v285_v4 = vpop.f32.mrb[12].mxu1 }
 0x257   :  { %298 = vrot.lane.b32.xlu0 %v285_v4, %s1636_s0  ;;  %v287_v5 = vpop.f32.mrb[13].mxu1 }
 0x258   :  { %v289_v6 = vpop.f32.mrb[14].mxu1 }
 0x259   :  { %300 = vrot.lane.b32.xlu1 %v289_v6, %s1636_s0  ;;  %v291_v7 = vpop.f32.mrb[15].mxu1 }
 0x25b   :  { %306 = vrot.lane.b32.xlu0 %v287_v5, %s1636_s0 }
 0x25d   :  { %308 = vrot.lane.b32.xlu1 %v291_v7, %s1636_s0 }
 0x25f   :  { %294 = vrot.lane.b32.xlu0 %v275_v63, %s1636_s0 }
 0x261   :  { %296 = vrot.lane.b32.xlu1 %v279_v1, %s1636_s0 }
 0x263   :  { %302 = vrot.lane.b32.xlu0 %v277_v0, %s1636_s0 }
 0x265   :  { %304 = vrot.lane.b32.xlu1 %v281_v2, %s1636_s0 }
 0x267   :  { %409 = vperm.xlu0 %1535, %v403_v8  }
 0x269   :  { %414 = vperm.xlu1 %1536, %v404_v9  }
 0x26b   :  { %680 = vperm.xlu0 %1535, %v1448_v10  }
 0x26d   :  { %685 = vperm.xlu1 %1536, %v1449_v11  }
 0x26f   :  { %670 = vperm.xlu0 %1535, %v1446_v12  }
 0x271   :  { %675 = vperm.xlu1 %1536, %v1447_v13  }
 0x2c9   :  { %v299_v20 = vpop.permute.xlu0 %298 }
 0x2cb   :  { %v301_v22 = vpop.permute.xlu1 %300 }
 0x2cd   :  { %v307_v25 = vpop.permute.xlu0 %306 }
 0x2ce   :  { %v313_v26 = vsel %vm310_vm7, %v299_v20, %v307_v25  ;;  %v317_v27 = vsel %vm310_vm7, %v307_v25, %v299_v20 }
 0x2cf   :  { %v329_v28 = vsel %vm1809_vm8, %v317_v27, 0.0  ;;  %v330_v29 = vsel %vm1809_vm8, %v313_v26, 0.0  ;;  %v309_v30 = vpop.permute.xlu1 %308 }
 0x2d0   :  { %v337_v31 = vadd.f32 %v329_v28, %v265_v59  ;;  %v338_v32 = vadd.f32 %v330_v29, %v267_v60  ;;  %v314_v33 = vsel %vm310_vm7, %v301_v22, %v309_v30  ;;  %v318_v34 = vsel %vm310_vm7, %v309_v30, %v301_v22 }
 0x2d1   :  { %v331_v35 = vsel %vm1809_vm8, %v318_v34, 0.0  ;;  %v332_v36 = vsel %vm1809_vm8, %v314_v33, 0.0  ;;  %v295_v37 = vpop.permute.xlu0 %294  ;;  %v1546_v33 = vld [vmem:[%s2179_s5 + $0x8] sm:$0xff]  }
 0x2d2   :  { %v369_v38 = vadd.f32 %v358_v14, %v337_v31  ;;  %v370_v39 = vadd.f32 %v358_v14, %v338_v32  ;;  %v339_v40 = vadd.f32 %v331_v35, %v269_v61  ;;  %v340_v41 = vadd.f32 %v332_v36, %v271_v62  ;;  %v1545_v32 = vld [vmem:[%s2179_s5] sm:$0xff]  }
 0x2d3   :  { %v297_v42 = vpop.permute.xlu1 %296 }
 0x2d4   :  { %v377_v47 = vmul.f32 0.5, %v369_v38  ;;  %v378_v48 = vmul.f32 0.5, %v370_v39  ;;  %v371_v49 = vadd.f32 %v363_v15, %v339_v40  ;;  %v372_v50 = vadd.f32 %v363_v15, %v340_v41 }
 0x2d5   :  { %v303_v51 = vpop.permute.xlu0 %302 }
 0x2d6   :  { %1562 = vtanh.f32 %v377_v47  ;;  %v379_v52 = vmul.f32 0.5, %v371_v49  ;;  %v380_v53 = vmul.f32 0.5, %v372_v50  ;;  %v311_v54 = vsel %vm310_vm7, %v295_v37, %v303_v51 }
 0x2d7   :  { %1564 = vtanh.f32 %v378_v48  ;;  %v315_v59 = vsel %vm310_vm7, %v303_v51, %v295_v37  ;;  %v326_v60 = vsel %vm1809_vm8, %v311_v54, 0.0  ;;  %v305_v61 = vpop.permute.xlu1 %304 }
 0x2d8   :  { %1566 = vtanh.f32 %v379_v52  ;;  %v325_v62 = vsel %vm1809_vm8, %v315_v59, 0.0  ;;  %v334_v63 = vadd.f32 %v326_v60, %v1781_v56  ;;  %v312_v0 = vsel %vm310_vm7, %v297_v42, %v305_v61 }
 0x2d9   :  { %1568 = vtanh.f32 %v380_v53  ;;  %v333_v1 = vadd.f32 %v325_v62, %v1779_v55  ;;  %v316_v2 = vsel %vm310_vm7, %v305_v61, %v297_v42  ;;  %v328_v4 = vsel %vm1809_vm8, %v312_v0, 0.0 }
 0x2da   :  { %v366_v5 = vadd.f32 %v348_v16, %v334_v63  ;;  %v327_v6 = vsel %vm1809_vm8, %v316_v2, 0.0  ;;  %v336_v7 = vadd.f32 %v328_v4, %v1785_v58 }
 0x2db   :  { %v365_v8 = vadd.f32 %v348_v16, %v333_v1  ;;  %v335_v56 = vadd.f32 %v327_v6, %v1783_v57 }
 0x2dc   :  { %1570 = vtanh.f32 %v366_v5  ;;  %v368_v9 = vadd.f32 %v353_v18, %v336_v7 }
 0x2dd   :  { %1572 = vtanh.f32 %v365_v8  ;;  %v367_v10 = vadd.f32 %v353_v18, %v335_v56 }
 0x2de   :  { %1574 = vtanh.f32 %v368_v9 }
 0x2df   :  { %1576 = vtanh.f32 %v367_v10  ;;  %v1454_v10 = vld [vmem:[%s2180_s6 + $0x20] sm:$0xff] }
 0x2e0   :  { %v1563_v55 = vpop.eup %1562 }
 0x2e1   :  { %v1565_v11 = vpop.eup %1564  ;;  %v385_v13 = vadd.f32 1.0, %v1563_v55  ;;  %v1455_v55 = vld [vmem:[%s2180_s6 + $0x28] sm:$0xff] }
 0x2e2   :  { %v1567_v12 = vpop.eup %1566  ;;  %v386_v14 = vadd.f32 1.0, %v1565_v11  ;;  %v1480_v11 = vld [vmem:[%s2178_s4 + $0x50] sm:$0xff] }
 0x2e3   :  { %v1569_v15 = vpop.eup %1568  ;;  %v387_v17 = vadd.f32 1.0, %v1567_v12  ;;  %v389_v58 = vmul.f32 0.5, %v385_v13  ;;  %v1481_v12 = vld [vmem:[%s2178_s4 + $0x58] sm:$0xff]  ;;  %v1478_v13 = vld [vmem:[%s2178_s4 + $0x40] sm:$0xff] }
 0x2e4   :  { %v388_v19 = vadd.f32 1.0, %v1569_v15  ;;  %v390_v20 = vmul.f32 0.5, %v386_v14  ;;  %v1479_v14 = vld [vmem:[%s2178_s4 + $0x48] sm:$0xff] }
 0x2e5   :  { %v391_v26 = vmul.f32 0.5, %v387_v17 }
 0x2e6   :  { %v1571_v22 = vpop.eup %1570  ;;  %v392_v23 = vmul.f32 0.5, %v388_v19  ;;  %v410_v35 = vpop.permute.xlu0 %409 }
 0x2e7   :  { %v1573_v16 = vpop.eup %1572  ;;  %v394_v57 = vmul.f32 %v1571_v22, %v390_v20  ;;  %v641_v20 = vsel %vm47_vm9, 1, %v1634_v3 }
 0x2e8   :  { %v1575_v25 = vpop.eup %1574  ;;  %v393_v27 = vmul.f32 %v1573_v16, %v389_v58  ;;  %v415_v37 = vpop.permute.xlu1 %414  ;;  %v645_v58 = vrot.slane %v641_v20, %v1736_v24 }
 0x2e9   :  { %v1577_v18 = vpop.eup %1576  ;;  %v396_v28 = vmul.f32 %v1575_v25, %v392_v23 }
 0x2ea   :  { %v395_v29 = vmul.f32 %v1577_v18, %v391_v26  ;;  %v681_v15 = vpop.permute.xlu0 %680  ;;  %vm1925_vm11 = vcmp.eq.s32.totalorder %v645_v58, 1 }
 0x2eb   :  { %v402_v30 = vpack.c.bf16 %v396_v28, %v394_v57 }
 0x2ec   :  { %v401_v31 = vpack.c.bf16 %v395_v29, %v393_v27  ;;  %v686_v17 = vpop.permute.xlu1 %685 }
 0x2ed   :  { %443 = vmatprep.subr.bf16.mxu0 %v402_v30 }
 0x2ee   :  { %444 = vmatpush1.bf16.msra.mxu0 %v401_v31  ;;  %v671_v19 = vpop.permute.xlu0 %670 }
 0x2f0   :  { %v676_v22 = vpop.permute.xlu1 %675 }
 0x2f1   :  { %1428 = vmatmul.mubr.msk.bf16.vlgmr.msra.gmra.mrb[8].mxu0 %vm208_vm5, %v1545_v32 }
 0x2f2   :  { %485 = vmatprep.mubr.bf16.mxu0 %v1634_v3 }
 0x2f9   :  { %1429 = vmatmul.mubr.msk.bf16.gmra.mrb[12].mxu0 %vm208_vm5, %v1546_v33 }
 0x2fa   :  { %575 = vmatprep.mubr.bf16.mxu0 %v1634_v3 }
 0x3c4   :  { %v477_v34 = vpop.f32.mrb[8].mxu0 }
 0x3c5   :  { %v479_v36 = vpop.f32.mrb[9].mxu0  ;;  %v478_v40 = vadd.f32 %v477_v34, %v410_v35 }
 0x3c6   :  { %v480_v38 = vadd.f32 %v479_v36, %v410_v35  ;;  %v481_v39 = vpop.f32.mrb[10].mxu0 }
 0x3c7   :  { %v482_v41 = vadd.f32 %v481_v39, %v415_v37  ;;  %v483_v42 = vpop.f32.mrb[11].mxu0  ;;  %v1869_v51 = vadd.f32 %v478_v40, %v1745_v45  ;;  %v1550_v45 = vld [vmem:[%s2177_s3 + $0x38] sm:$0xff]  }
 0x3c8   :  { %v484_v47 = vadd.f32 %v483_v42, %v415_v37  ;;  %v1863_v49 = vadd.f32 %v480_v38, %v1741_v43  ;;  %v1548_v43 = vld [vmem:[%s2177_s3 + $0x28] sm:$0xff]  }
 0x3c9   :  { %v1860_v48 = vadd.f32 %v482_v41, %v1747_v46  ;;  %v1547_v46 = vld [vmem:[%s2177_s3 + $0x20] sm:$0xff]  }
 0x3ca   :  { %v1866_v50 = vadd.f32 %v484_v47, %v1743_v44  ;;  %v1549_v44 = vld [vmem:[%s2177_s3 + $0x30] sm:$0xff]  }
 0x3cb   :  { %v509_v53 = vpack.c.bf16 %v1860_v48, %v1869_v51 }
 0x3cc   :  { %v510_v52 = vpack.c.bf16 %v1866_v50, %v1863_v49 }
 0x3ce   :  { %543 = vmatprep.subr.bf16.mxu0 %v510_v52 }
 0x3cf   :  { %544 = vmatpush1.bf16.msra.mxu0 %v509_v53 }
 0x3d2   :  { %1442 = vmatmul.mubr.msk.bf16.vlgmr.msra.gmra.mrb[16].mxu0 %vm208_vm5, %v1547_v46 }
 0x3d3   :  { %585 = vmatprep.mubr.bf16.mxu0 %v1634_v3 }
 0x3da   :  { %1443 = vmatmul.mubr.msk.bf16.gmra.mrb[20].mxu0 %vm208_vm5, %v1548_v43 }
 0x3db   :  { %595 = vmatprep.mubr.bf16.mxu0 %v1634_v3 }
 0x3e2   :  { %1444 = vmatmul.mubr.msk.bf16.gmra.mrb[24].mxu0 %vm208_vm5, %v1549_v44 }
 0x3e3   :  { %605 = vmatprep.mubr.bf16.mxu0 %v1634_v3 }
 0x3ea   :  { %1445 = vmatmul.mubr.msk.bf16.gmra.mrb[28].mxu0 %vm208_vm5, %v1550_v45 }
 0x3eb   :  { %800 = vmatprep.mubr.bf16.mxu0 %v1634_v3 }
 0x4a5   :  { %v1895_v54 = vpop.f32.mrb[16].mxu0 }
 0x4a6   :  { %v1897_v59 = vpop.f32.mrb[17].mxu0 }
 0x4a7   :  { %v1899_v60 = vpop.f32.mrb[18].mxu0 }
 0x4a8   :  { %v1901_v61 = vpop.f32.mrb[19].mxu0 }
 0x4ad   :  { %v587_v62 = vpop.f32.mrb[20].mxu0 }
 0x4ae   :  { %v589_v63 = vpop.f32.mrb[21].mxu0 }
 0x4af   :  { %v591_v0 = vpop.f32.mrb[22].mxu0 }
 0x4b0   :  { %v593_v1 = vpop.f32.mrb[23].mxu0 }
 0x4b5   :  { %v597_v2 = vpop.f32.mrb[24].mxu0 }
 0x4b6   :  { %v599_v4 = vpop.f32.mrb[25].mxu0 }
 0x4b7   :  { %v601_v5 = vpop.f32.mrb[26].mxu0 }
 0x4b8   :  { %v603_v6 = vpop.f32.mrb[27].mxu0 }
 0x4bd   :  { %v607_v7 = vpop.f32.mrb[28].mxu0 }
 0x4be   :  { %620 = vrot.lane.b32.xlu0 %v607_v7, %s1637_s30  ;;  %v609_v8 = vpop.f32.mrb[29].mxu0 }
 0x4bf   :  { %v611_v56 = vpop.f32.mrb[30].mxu0 }
 0x4c0   :  { %622 = vrot.lane.b32.xlu1 %v611_v56, %s1637_s30  ;;  %v613_v9 = vpop.f32.mrb[31].mxu0 }
 0x4c2   :  { %628 = vrot.lane.b32.xlu0 %v609_v8, %s1637_s30 }
 0x4c4   :  { %630 = vrot.lane.b32.xlu1 %v613_v9, %s1637_s30 }
 0x4c6   :  { %616 = vrot.lane.b32.xlu0 %v597_v2, %s1637_s30 }
 0x4c8   :  { %618 = vrot.lane.b32.xlu1 %v601_v5, %s1637_s30 }
 0x4ca   :  { %624 = vrot.lane.b32.xlu0 %v599_v4, %s1637_s30 }
 0x4cc   :  { %626 = vrot.lane.b32.xlu1 %v603_v6, %s1637_s30 }
 0x4ce   :  { %734 = vperm.xlu0 %1535, %v1454_v10  }
 0x4d0   :  { %739 = vperm.xlu1 %1536, %v1455_v55  }
 0x4d2   :  { %1009 = vperm.xlu0 %1535, %v1480_v11  }
 0x4d4   :  { %1014 = vperm.xlu1 %1536, %v1481_v12  }
 0x4d6   :  { %999 = vperm.xlu0 %1535, %v1478_v13  }
 0x4d8   :  { %1004 = vperm.xlu1 %1536, %v1479_v14  }
 0x530   :  { %v621_v16 = vpop.permute.xlu0 %620 }
 0x532   :  { %v623_v23 = vpop.permute.xlu1 %622 }
 0x534   :  { %v629_v25 = vpop.permute.xlu0 %628 }
 0x535   :  { %v635_v26 = vsel %vm632_vm10, %v621_v16, %v629_v25  ;;  %v639_v27 = vsel %vm632_vm10, %v629_v25, %v621_v16 }
 0x536   :  { %v651_v18 = vsel %vm1925_vm11, %v639_v27, 0.0  ;;  %v652_v28 = vsel %vm1925_vm11, %v635_v26, 0.0  ;;  %v631_v29 = vpop.permute.xlu1 %630 }
 0x537   :  { %v659_v30 = vadd.f32 %v651_v18, %v587_v62  ;;  %v660_v31 = vadd.f32 %v652_v28, %v589_v63  ;;  %v636_v32 = vsel %vm632_vm10, %v623_v23, %v631_v29  ;;  %v640_v33 = vsel %vm632_vm10, %v631_v29, %v623_v23 }
 0x538   :  { %v653_v34 = vsel %vm1925_vm11, %v640_v33, 0.0  ;;  %v654_v35 = vsel %vm1925_vm11, %v636_v32, 0.0  ;;  %v617_v36 = vpop.permute.xlu0 %616 }
 0x539   :  { %v692_v37 = vadd.f32 %v681_v15, %v659_v30  ;;  %v693_v38 = vadd.f32 %v681_v15, %v660_v31  ;;  %v661_v39 = vadd.f32 %v653_v34, %v591_v0  ;;  %v662_v40 = vadd.f32 %v654_v35, %v593_v1  ;;  %v1551_v31 = vld [vmem:[%s2179_s5 + $0x10] sm:$0xff]  }
 0x53a   :  { %v619_v41 = vpop.permute.xlu1 %618 }
 0x53b   :  { %v700_v42 = vmul.f32 0.5, %v692_v37  ;;  %v701_v47 = vmul.f32 0.5, %v693_v38  ;;  %v694_v52 = vadd.f32 %v686_v17, %v661_v39  ;;  %v695_v53 = vadd.f32 %v686_v17, %v662_v40 }
 0x53c   :  { %v625_v46 = vpop.permute.xlu0 %624 }
 0x53d   :  { %1578 = vtanh.f32 %v700_v42  ;;  %v702_v43 = vmul.f32 0.5, %v694_v52  ;;  %v703_v44 = vmul.f32 0.5, %v695_v53  ;;  %v633_v45 = vsel %vm632_vm10, %v617_v36, %v625_v46 }
 0x53e   :  { %1580 = vtanh.f32 %v701_v47  ;;  %v637_v62 = vsel %vm632_vm10, %v625_v46, %v617_v36  ;;  %v648_v63 = vsel %vm1925_vm11, %v633_v45, 0.0  ;;  %v627_v0 = vpop.permute.xlu1 %626 }
 0x53f   :  { %1582 = vtanh.f32 %v702_v43  ;;  %v647_v1 = vsel %vm1925_vm11, %v637_v62, 0.0  ;;  %v656_v2 = vadd.f32 %v648_v63, %v1897_v59  ;;  %v634_v4 = vsel %vm632_vm10, %v619_v41, %v627_v0 }
 0x540   :  { %1584 = vtanh.f32 %v703_v44  ;;  %v655_v5 = vadd.f32 %v647_v1, %v1895_v54  ;;  %v638_v6 = vsel %vm632_vm10, %v627_v0, %v619_v41  ;;  %v650_v7 = vsel %vm1925_vm11, %v634_v4, 0.0  ;;  %v1552_v44 = vld [vmem:[%s2177_s3 + $0x40] sm:$0xff]  }
 0x541   :  { %v689_v8 = vadd.f32 %v671_v19, %v656_v2  ;;  %v649_v56 = vsel %vm1925_vm11, %v638_v6, 0.0  ;;  %v658_v9 = vadd.f32 %v650_v7, %v1901_v61 }
 0x542   :  { %v688_v10 = vadd.f32 %v671_v19, %v655_v5  ;;  %v657_v59 = vadd.f32 %v649_v56, %v1899_v60 }
 0x543   :  { %1586 = vtanh.f32 %v689_v8  ;;  %v691_v55 = vadd.f32 %v676_v22, %v658_v9 }
 0x544   :  { %1588 = vtanh.f32 %v688_v10  ;;  %v690_v11 = vadd.f32 %v676_v22, %v657_v59 }
 0x545   :  { %1590 = vtanh.f32 %v691_v55  ;;  %v405_v55 = vld [vmem:[%s2180_s6 + $0x10] sm:$0xff] }
 0x546   :  { %1592 = vtanh.f32 %v690_v11  ;;  %v406_v11 = vld [vmem:[%s2180_s6 + $0x18] sm:$0xff] }
 0x547   :  { %v1579_v54 = vpop.eup %1578 }
 0x548   :  { %v1581_v12 = vpop.eup %1580  ;;  %v708_v14 = vadd.f32 1.0, %v1579_v54  ;;  %v1456_v54 = vld [vmem:[%s2180_s6 + $0x30] sm:$0xff] }
 0x549   :  { %v1583_v13 = vpop.eup %1582  ;;  %v709_v15 = vadd.f32 1.0, %v1581_v12  ;;  %v1556_v12 = vld [vmem:[%s2179_s5 + $0x18] sm:$0xff]  }
 0x54a   :  { %v1585_v17 = vpop.eup %1584  ;;  %v710_v20 = vadd.f32 1.0, %v1583_v13  ;;  %v712_v61 = vmul.f32 0.5, %v708_v14  ;;  %v1457_v13 = vld [vmem:[%s2180_s6 + $0x38] sm:$0xff]  ;;  %v1488_v14 = vld [vmem:[%s2180_s6 + $0x50] sm:$0xff] }
 0x54b   :  { %v711_v58 = vadd.f32 1.0, %v1585_v17  ;;  %v713_v16 = vmul.f32 0.5, %v709_v15  ;;  %v1489_v15 = vld [vmem:[%s2180_s6 + $0x58] sm:$0xff]  ;;  %v1156_v17 = vld [vmem:[%s2182_s8] sm:$0xff] }
 0x54c   :  { %v714_v26 = vmul.f32 0.5, %v710_v20  ;;  %v1157_v20 = vld [vmem:[%s2182_s8 + $0x8] sm:$0xff] }
 0x54d   :  { %v1587_v23 = vpop.eup %1586  ;;  %v715_v57 = vmul.f32 0.5, %v711_v58  ;;  %v735_v32 = vpop.permute.xlu0 %734  ;;  %v1270_v58 = vld [vmem:[%s2184_s10] sm:$0xff] }
 0x54e   :  { %v1589_v19 = vpop.eup %1588  ;;  %v717_v60 = vmul.f32 %v1587_v23, %v713_v16 }
 0x54f   :  { %v1591_v25 = vpop.eup %1590  ;;  %v716_v27 = vmul.f32 %v1589_v19, %v712_v61  ;;  %v740_v36 = vpop.permute.xlu1 %739  ;;  %v970_v19 = vsel %vm48_vm12, 1, %v1634_v3 }
 0x550   :  { %v1593_v22 = vpop.eup %1592  ;;  %v719_v18 = vmul.f32 %v1591_v25, %v715_v57 }
 0x551   :  { %v718_v28 = vmul.f32 %v1593_v22, %v714_v26  ;;  %v1010_v16 = vpop.permute.xlu0 %1009 }
 0x552   :  { %v726_v29 = vpack.c.bf16 %v719_v18, %v717_v60  ;;  %v974_v60 = vrot.slane %v970_v19, %v1736_v24 }
 0x553   :  { %v725_v30 = vpack.c.bf16 %v718_v28, %v716_v27  ;;  %v1015_v23 = vpop.permute.xlu1 %1014 }
 0x554   :  { %768 = vmatprep.subr.bf16.mxu0 %v726_v29  ;;  %vm2050_vm14 = vcmp.eq.s32.totalorder %v974_v60, 1 }
 0x555   :  { %769 = vmatpush1.bf16.msra.mxu0 %v725_v30  ;;  %v1000_v61 = vpop.permute.xlu0 %999 }
 0x557   :  { %v1005_v57 = vpop.permute.xlu1 %1004 }
 0x558   :  { %1460 = vmatmul.mubr.msk.bf16.vlgmr.msra.gmra.mrb[32].mxu0 %vm208_vm5, %v1551_v31 }
 0x559   :  { %810 = vmatprep.mubr.bf16.mxu0 %v1634_v3 }
 0x560   :  { %1461 = vmatmul.mubr.msk.bf16.gmra.mrb[12].mxu0 %vm208_vm5, %v1556_v12 }
 0x561   :  { %1127 = vmatprep.mubr.bf16.mxu0 %v1634_v3 }
 0x62b   :  { %v802_v33 = vpop.f32.mrb[32].mxu0 }
 0x62c   :  { %v803_v34 = vadd.f32 %v802_v33, %v735_v32  ;;  %v804_v35 = vpop.f32.mrb[33].mxu0 }
 0x62d   :  { %v805_v37 = vadd.f32 %v804_v35, %v735_v32  ;;  %v806_v38 = vpop.f32.mrb[34].mxu0 }
 0x62e   :  { %v807_v39 = vadd.f32 %v806_v38, %v740_v36  ;;  %v808_v40 = vpop.f32.mrb[35].mxu0  ;;  %v821_v42 = vadd.f32 %v803_v34, %v1869_v51 }
 0x62f   :  { %v809_v41 = vadd.f32 %v808_v40, %v740_v36  ;;  %v822_v52 = vadd.f32 %v805_v37, %v1863_v49  ;;  %v1554_v49 = vld [vmem:[%s2177_s3 + $0x50] sm:$0xff]  }
 0x630   :  { %v823_v47 = vadd.f32 %v807_v39, %v1860_v48  ;;  %v1553_v48 = vld [vmem:[%s2177_s3 + $0x48] sm:$0xff]  }
 0x631   :  { %v824_v53 = vadd.f32 %v809_v41, %v1866_v50  ;;  %v1555_v50 = vld [vmem:[%s2177_s3 + $0x58] sm:$0xff]   ;;  %s1638_s3 = smov 8  }
 0x632   :  { %v838_v46 = vpack.c.bf16 %v823_v47, %v821_v42 }
 0x633   :  { %v839_v43 = vpack.c.bf16 %v824_v53, %v822_v52 }
 0x635   :  { %872 = vmatprep.subr.bf16.mxu1 %v839_v43 }
 0x636   :  { %873 = vmatpush1.bf16.msra.mxu1 %v838_v46 }
 0x639   :  { %1474 = vmatmul.mubr.msk.bf16.vlgmr.msra.gmra.mrb[16].mxu1 %vm208_vm5, %v1552_v44 }
 0x63a   :  { %914 = vmatprep.mubr.bf16.mxu1 %v1634_v3 }
 0x641   :  { %1475 = vmatmul.mubr.msk.bf16.gmra.mrb[20].mxu1 %vm208_vm5, %v1553_v48 }
 0x642   :  { %924 = vmatprep.mubr.bf16.mxu1 %v1634_v3 }
 0x649   :  { %1476 = vmatmul.mubr.msk.bf16.gmra.mrb[24].mxu1 %vm208_vm5, %v1554_v49 }
 0x64a   :  { %934 = vmatprep.mubr.bf16.mxu1 %v1634_v3 }
 0x651   :  { %1477 = vmatmul.mubr.msk.bf16.gmra.mrb[28].mxu1 %vm208_vm5, %v1555_v50 }
 0x652   :  { %1208 = vmatprep.mubr.bf16.mxu1 %v1634_v3 }
 0x70c   :  { %v1994_v51 = vpop.f32.mrb[16].mxu1 }
 0x70d   :  { %v1996_v45 = vpop.f32.mrb[17].mxu1 }
 0x70e   :  { %v1998_v62 = vpop.f32.mrb[18].mxu1 }
 0x70f   :  { %v2000_v63 = vpop.f32.mrb[19].mxu1 }
 0x714   :  { %v916_v0 = vpop.f32.mrb[20].mxu1 }
 0x715   :  { %v918_v1 = vpop.f32.mrb[21].mxu1 }
 0x716   :  { %v2002_v2 = vpop.f32.mrb[22].mxu1 }
 0x717   :  { %v2004_v4 = vpop.f32.mrb[23].mxu1 }
 0x71c   :  { %v926_v5 = vpop.f32.mrb[24].mxu1 }
 0x71d   :  { %v928_v6 = vpop.f32.mrb[25].mxu1 }
 0x71e   :  { %v930_v7 = vpop.f32.mrb[26].mxu1 }
 0x71f   :  { %v932_v8 = vpop.f32.mrb[27].mxu1 }
 0x724   :  { %v936_v56 = vpop.f32.mrb[28].mxu1 }
 0x725   :  { %949 = vrot.lane.b32.xlu0 %v936_v56, %s1638_s3  ;;  %v938_v9 = vpop.f32.mrb[29].mxu1 }
 0x726   :  { %v940_v10 = vpop.f32.mrb[30].mxu1 }
 0x727   :  { %951 = vrot.lane.b32.xlu1 %v940_v10, %s1638_s3  ;;  %v942_v59 = vpop.f32.mrb[31].mxu1 }
 0x729   :  { %957 = vrot.lane.b32.xlu0 %v938_v9, %s1638_s3 }
 0x72b   :  { %959 = vrot.lane.b32.xlu1 %v942_v59, %s1638_s3 }
 0x72d   :  { %945 = vrot.lane.b32.xlu0 %v926_v5, %s1638_s3 }
 0x72f   :  { %947 = vrot.lane.b32.xlu1 %v930_v7, %s1638_s3 }
 0x731   :  { %953 = vrot.lane.b32.xlu0 %v928_v6, %s1638_s3 }
 0x733   :  { %955 = vrot.lane.b32.xlu1 %v932_v8, %s1638_s3 }
 0x735   :  { %419 = vperm.xlu0 %1535, %v405_v55  }
 0x737   :  { %424 = vperm.xlu1 %1536, %v406_v11  }
 0x739   :  { %744 = vperm.xlu0 %1535, %v1456_v54  }
 0x73b   :  { %749 = vperm.xlu1 %1536, %v1457_v13  }
 0x73d   :  { %1071 = vperm.xlu0 %1535, %v1488_v14  }
 0x73f   :  { %1076 = vperm.xlu1 %1536, %v1489_v15  }
 0x741   :  { %1160 = vperm.xlu0 %1535, %v1156_v17  }
 0x743   :  { %1165 = vperm.xlu1 %1536, %v1157_v20  }
 0x747   :  { %1276 = vperm.xlu1 %1536, %v1270_v58  }
 0x797   :  { %v950_v25 = vpop.permute.xlu0 %949 }
 0x799   :  { %v952_v26 = vpop.permute.xlu1 %951 }
 0x79b   :  { %v958_v22 = vpop.permute.xlu0 %957 }
 0x79c   :  { %v964_v18 = vsel %vm961_vm13, %v950_v25, %v958_v22  ;;  %v968_v28 = vsel %vm961_vm13, %v958_v22, %v950_v25 }
 0x79d   :  { %v980_v29 = vsel %vm2050_vm14, %v968_v28, 0.0  ;;  %v981_v24 = vsel %vm2050_vm14, %v964_v18, 0.0  ;;  %v960_v30 = vpop.permute.xlu1 %959  ;;  %v1557_v28 = vld [vmem:[%s2179_s5 + $0x20] sm:$0xff]  }
 0x79e   :  { %v988_v31 = vadd.f32 %v980_v29, %v916_v0  ;;  %v989_v32 = vadd.f32 %v981_v24, %v918_v1  ;;  %v965_v33 = vsel %vm961_vm13, %v952_v26, %v960_v30  ;;  %v969_v34 = vsel %vm961_vm13, %v960_v30, %v952_v26  ;;  %v1558_v29 = vld [vmem:[%s2179_s5 + $0x28] sm:$0xff]  }
 0x79f   :  { %v982_v35 = vsel %vm2050_vm14, %v969_v34, 0.0  ;;  %v983_v36 = vsel %vm2050_vm14, %v965_v33, 0.0  ;;  %v946_v37 = vpop.permute.xlu0 %945 }
 0x7a0   :  { %v1021_v38 = vadd.f32 %v1010_v16, %v988_v31  ;;  %v1022_v39 = vadd.f32 %v1010_v16, %v989_v32  ;;  %v990_v40 = vadd.f32 %v982_v35, %v2002_v2  ;;  %v991_v41 = vadd.f32 %v983_v36, %v2004_v4 }
 0x7a1   :  { %v948_v42 = vpop.permute.xlu1 %947 }
 0x7a2   :  { %v1029_v47 = vmul.f32 0.5, %v1021_v38  ;;  %v1030_v52 = vmul.f32 0.5, %v1022_v39  ;;  %v1023_v53 = vadd.f32 %v1015_v23, %v990_v40  ;;  %v1024_v46 = vadd.f32 %v1015_v23, %v991_v41 }
 0x7a3   :  { %v954_v43 = vpop.permute.xlu0 %953 }
 0x7a4   :  { %1594 = vtanh.f32 %v1029_v47  ;;  %v1031_v44 = vmul.f32 0.5, %v1023_v53  ;;  %v1032_v48 = vmul.f32 0.5, %v1024_v46  ;;  %v962_v49 = vsel %vm961_vm13, %v946_v37, %v954_v43 }
 0x7a5   :  { %1596 = vtanh.f32 %v1030_v52  ;;  %v966_v50 = vsel %vm961_vm13, %v954_v43, %v946_v37  ;;  %v977_v0 = vsel %vm2050_vm14, %v962_v49, 0.0  ;;  %v956_v1 = vpop.permute.xlu1 %955 }
 0x7a6   :  { %1598 = vtanh.f32 %v1031_v44  ;;  %v976_v2 = vsel %vm2050_vm14, %v966_v50, 0.0  ;;  %v985_v4 = vadd.f32 %v977_v0, %v1996_v45  ;;  %v963_v5 = vsel %vm961_vm13, %v948_v42, %v956_v1 }
 0x7a7   :  { %1600 = vtanh.f32 %v1032_v48  ;;  %v984_v6 = vadd.f32 %v976_v2, %v1994_v51  ;;  %v967_v7 = vsel %vm961_vm13, %v956_v1, %v948_v42  ;;  %v979_v8 = vsel %vm2050_vm14, %v963_v5, 0.0 }
 0x7a8   :  { %v1018_v56 = vadd.f32 %v1000_v61, %v985_v4  ;;  %v978_v9 = vsel %vm2050_vm14, %v967_v7, 0.0  ;;  %v987_v10 = vadd.f32 %v979_v8, %v2000_v63 }
 0x7a9   :  { %v1017_v59 = vadd.f32 %v1000_v61, %v984_v6  ;;  %v986_v45 = vadd.f32 %v978_v9, %v1998_v62  ;;  %v1559_v6 = vld [vmem:[%s2181_s7] sm:$0xff]  }
 0x7aa   :  { %1602 = vtanh.f32 %v1018_v56  ;;  %v1020_v55 = vadd.f32 %v1005_v57, %v987_v10 }
 0x7ab   :  { %1604 = vtanh.f32 %v1017_v59  ;;  %v1019_v11 = vadd.f32 %v1005_v57, %v986_v45 }
 0x7ac   :  { %1606 = vtanh.f32 %v1020_v55 }
 0x7ad   :  { %1608 = vtanh.f32 %v1019_v11 }
 0x7ae   :  { %v1595_v51 = vpop.eup %1594 }
 0x7af   :  { %v1597_v54 = vpop.eup %1596  ;;  %v1037_v13 = vadd.f32 1.0, %v1595_v51 }
 0x7b0   :  { %v1599_v12 = vpop.eup %1598  ;;  %v1038_v14 = vadd.f32 1.0, %v1597_v54 }
 0x7b1   :  { %v1601_v15 = vpop.eup %1600  ;;  %v1039_v17 = vadd.f32 1.0, %v1599_v12  ;;  %v1041_v63 = vmul.f32 0.5, %v1037_v13 }
 0x7b2   :  { %v1040_v20 = vadd.f32 1.0, %v1601_v15  ;;  %v1042_v58 = vmul.f32 0.5, %v1038_v14 }
 0x7b3   :  { %v1043_v60 = vmul.f32 0.5, %v1039_v17 }
 0x7b4   :  { %v1603_v16 = vpop.eup %1602  ;;  %v1044_v61 = vmul.f32 0.5, %v1040_v20  ;;  %v420_v24 = vpop.permute.xlu0 %419 }
 0x7b5   :  { %v1605_v23 = vpop.eup %1604  ;;  %v1046_v62 = vmul.f32 %v1603_v16, %v1042_v58 }
 0x7b6   :  { %v1607_v19 = vpop.eup %1606  ;;  %v1045_v25 = vmul.f32 %v1605_v23, %v1041_v63  ;;  %v425_v30 = vpop.permute.xlu1 %424  ;;  %v1560_v23 = vld [vmem:[%s2183_s9] sm:$0xff]  }
 0x7b7   :  { %v1609_v57 = vpop.eup %1608  ;;  %v1048_v26 = vmul.f32 %v1607_v19, %v1044_v61 }
 0x7b8   :  { %v1047_v27 = vmul.f32 %v1609_v57, %v1043_v60  ;;  %v745_v31 = vpop.permute.xlu0 %744  ;;  %v1561_v60 = vld [vmem:[%s2183_s9 + $0x8] sm:$0xff]   ;;  %v1272_v57 = vld [vmem:[%s2184_s10 + $0x10] sm:$0xff] }
 0x7b9   :  { %v1055_v22 = vpack.c.bf16 %v1048_v26, %v1046_v62  ;;  %v1508_v38 = vadd.f32 %v745_v31, %v420_v24  ;;  %v1271_v26 = vld [vmem:[%s2184_s10 + $0x8] sm:$0xff] }
 0x7ba   :  { %v1054_v18 = vpack.c.bf16 %v1047_v27, %v1045_v25  ;;  %v750_v32 = vpop.permute.xlu1 %749 }
 0x7bb   :  { %1095 = vmatprep.subr.bf16.mxu0 %v1055_v22  ;;  %v1514_v40 = vadd.f32 %v750_v32, %v425_v30 }
 0x7bc   :  { %1096 = vmatpush1.bf16.msra.mxu0 %v1054_v18  ;;  %v1072_v37 = vpop.permute.xlu0 %1071 }
 0x7bd   :  { %v1509_v41 = vadd.f32 %v1508_v38, %v1072_v37 }
 0x7be   :  { %v1077_v39 = vpop.permute.xlu1 %1076 }
 0x7bf   :  { %1492 = vmatmul.mubr.msk.bf16.vlgmr.msra.gmra.mrb[36].mxu0 %vm208_vm5, %v1557_v28  ;;  %v1515_v47 = vadd.f32 %v1514_v40, %v1077_v39 }
 0x7c0   :  { %1133 = vmatprep.mubr.bf16.mxu0 %v1634_v3  ;;  %v1161_v7 = vpop.permute.xlu0 %1160 }
 0x7c2   :  { %v1166_v10 = vpop.permute.xlu1 %1165 }
 0x7c6   :  { %v1277_v21 = vpop.permute.xlu1 %1276 }
 0x7c7   :  { %1493 = vmatmul.mubr.msk.bf16.gmra.mrb[12].mxu0 %vm208_vm5, %v1558_v29 }
 0x892   :  { %v1129_v33 = vpop.f32.mrb[36].mxu0 }
 0x893   :  { %v1130_v34 = vpop.f32.mrb[37].mxu0 }
 0x894   :  { %v1131_v35 = vpop.f32.mrb[38].mxu0 }
 0x895   :  { %v1132_v36 = vpop.f32.mrb[39].mxu0 }
 0x89a   :  { %v1135_v42 = vpop.f32.mrb[12].mxu0 }
 0x89b   :  { %v1510_v52 = vadd.f32 %v1509_v41, %v1135_v42  ;;  %v1137_v53 = vpop.f32.mrb[13].mxu0 }
 0x89c   :  { %v1513_v46 = vadd.f32 %v1509_v41, %v1137_v53  ;;  %v1139_v43 = vpop.f32.mrb[14].mxu0 }
 0x89d   :  { %v1516_v44 = vadd.f32 %v1515_v47, %v1139_v43  ;;  %v1141_v48 = vpop.f32.mrb[15].mxu0  ;;  %v1148_v50 = vmax.f32 %v1510_v52, 0.0 }
 0x89e   :  { %v1519_v49 = vadd.f32 %v1515_v47, %v1141_v48  ;;  %v1149_v1 = vmax.f32 %v1513_v46, 0.0 }
 0x89f   :  { %v1150_v0 = vmax.f32 %v1516_v44, 0.0 }
 0x8a0   :  { %v1151_v2 = vmax.f32 %v1519_v49, 0.0 }
 0x8a1   :  { %v1154_v4 = vpack.c.bf16 %v1150_v0, %v1148_v50 }
 0x8a2   :  { %v1155_v5 = vpack.c.bf16 %v1151_v2, %v1149_v1 }
 0x8a4   :  { %1176 = vmatprep.subr.bf16.mxu1 %v1155_v5 }
 0x8a5   :  { %1177 = vmatpush1.bf16.msra.mxu1 %v1154_v4 }
 0x8a8   :  { %1495 = vmatmul.mubr.msk.bf16.vlgmr.msra.gmra.mrb[32].mxu1 %vm208_vm5, %v1559_v6 }
 0x8a9   :  { %1342 = vmatprep.mubr.bf16.mxu1 %v1634_v3 }
 0x97b   :  { %v1210_v8 = vpop.f32.mrb[32].mxu1 }
 0x97c   :  { %v1211_v56 = vadd.f32 %v1210_v8, %v1161_v7  ;;  %v1212_v9 = vpop.f32.mrb[33].mxu1 }
 0x97d   :  { %v1213_v59 = vadd.f32 %v1212_v9, %v1161_v7  ;;  %v1214_v45 = vpop.f32.mrb[34].mxu1 }
 0x97e   :  { %v1219_v55 = vmax.f32 %v1211_v56, 0.0  ;;  %v1215_v11 = vadd.f32 %v1214_v45, %v1166_v10  ;;  %v1216_v51 = vpop.f32.mrb[35].mxu1 }
 0x97f   :  { %v1217_v54 = vadd.f32 %v1216_v51, %v1166_v10  ;;  %v1220_v12 = vmax.f32 %v1213_v59, 0.0 }
 0x980   :  { %v1221_v13 = vmax.f32 %v1215_v11, 0.0  ;;  %v1234_v14 = vsel %vm1223_vm15, %v1219_v55, -inf  ;;  %v1226_v15 = vsel %vm1223_vm15, %v1219_v55, 0.0 }
 0x981   :  { %v1222_v17 = vmax.f32 %v1217_v54, 0.0  ;;  %1236 = vmax.xlane.f32.xlu1 %v1234_v14  ;;  %1228 = vadd.xlane.f32.xlu0 %v1226_v15  ;;  %v1248_v16 = vsel %vm1223_vm15, %v1220_v12, -inf  ;;  %v1240_v63 = vsel %vm1223_vm15, %v1220_v12, 0.0 }
 0x982   :  { %v1268_v20 = vpack.c.bf16 %v1221_v13, %v1219_v55  ;;  %v1235_v61 = vsel %vm1223_vm15, %v1221_v13, -inf  ;;  %v1227_v62 = vsel %vm1223_vm15, %v1221_v13, 0.0 }
 0x983   :  { %v1269_v58 = vpack.c.bf16 %v1222_v17, %v1220_v12  ;;  %v1241_v19 = vsel %vm1223_vm15, %v1222_v17, 0.0  ;;  %v1249_v25 = vsel %vm1223_vm15, %v1222_v17, -inf }
 0x985   :  { %1250 = vmax.xlane.f32.xlu1 %v1248_v16  ;;  %1242 = vadd.xlane.f32.xlu0 %v1240_v63 }
 0x986   :  { %1310 = vmatprep.subr.bf16.mxu1 %v1269_v58 }
 0x987   :  { %1311 = vmatpush1.bf16.msra.mxu1 %v1268_v20 }
 0x989   :  { %1238 = vmax.xlane.f32.xlu0 %v1235_v61  ;;  %1230 = vadd.xlane.f32.xlu1 %v1227_v62 }
 0x98a   :  { %1498 = vmatmul.mubr.msk.bf16.vlgmr.msra.gmra.mrb[36].mxu1 %vm208_vm5, %v1560_v23 }
 0x98b   :  { %1352 = vmatprep.mubr.bf16.mxu1 %v1634_v3  ;;  %v1273_v3 = vld [vmem:[%s2184_s10 + $0x18] sm:$0xff] }
 0x98d   :  { %1244 = vadd.xlane.f32.xlu0 %v1241_v19 }
 0x991   :  { %1252 = vmax.xlane.f32.xlu0 %v1249_v25 }
 0x992   :  { %1499 = vmatmul.mubr.msk.bf16.gmra.mrb[40].mxu1 %vm208_vm5, %v1561_v60 }
 0x99a   :  { %1286 = vperm.xlu1 %1536, %v1272_v57  }
 0x99e   :  { %1291 = vperm.xlu1 %1536, %v1273_v3  }
 0x9a7   :  { %1281 = vperm.xlu0 %1535, %v1271_v26  }
 0xa0e   :  { %v1229_v27 = vpop.xlane.xlu0 %1228  ;;  %v1237_v22 = vpop.xlane.xlu1 %1236 }
 0xa0f   :  { %v1232_v29 = vmul.f32 0.03125, %v1229_v27 }
 0xa12   :  { %v1243_v18 = vpop.xlane.xlu0 %1242  ;;  %v1251_v28 = vpop.xlane.xlu1 %1250 }
 0xa13   :  { %v1246_v24 = vmul.f32 0.03125, %v1243_v18  ;;  %v1257_v30 = vsel %vm1254_vm0, %v1237_v22, %v1251_v28 }
 0xa14   :  { %1262 = vst.msk [vmem:[%s2186_s12 + $0x10] sm:$0xff] %vm1259_vm1, %v1257_v30 }
 0xa15   :  { %v1255_v31 = vsel %vm1254_vm0, %v1232_v29, %v1246_v24 }
 0xa16   :  { %1260 = vst.msk [vmem:[%s2186_s12] sm:$0xff] %vm1259_vm1, %v1255_v31  ;;  %v1239_v32 = vpop.xlane.xlu0 %1238  ;;  %v1231_v33 = vpop.xlane.xlu1 %1230 }
 0xa17   :  { %v1233_v35 = vmul.f32 0.03125, %v1231_v33 }
 0xa1a   :  { %v1245_v34 = vpop.xlane.xlu0 %1244  ;;  %v1287_v44 = vpop.permute.xlu1 %1286 }
 0xa1b   :  { %v1247_v36 = vmul.f32 0.03125, %v1245_v34 }
 0xa1d   :  { %v1256_v37 = vsel %vm1254_vm0, %v1233_v35, %v1247_v36 }
 0xa1e   :  { %1261 = vst.msk [vmem:[%s2186_s12 + $0x8] sm:$0xff] %vm1259_vm1, %v1256_v37  ;;  %v1253_v38 = vpop.xlane.xlu0 %1252  ;;  %v1292_v4 = vpop.permute.xlu1 %1291 }
 0xa1f   :  { %v1258_v39 = vsel %vm1254_vm0, %v1239_v32, %v1253_v38 }
 0xa20   :  { %1263 = vst.msk [vmem:[%s2186_s12 + $0x18] sm:$0xff] %vm1259_vm1, %v1258_v39  ;;  %s1639_s12 = smov [#allocation2]  }
 0xa21   :  { %s1396_s26 = sshll.u32 %s1639_s12, 4  ;;  %s1397_s26 = int_to_ptr.vmem [resolvable:$true] %s1396_s26 }
 0xa22   :  { %s1610_s0 = scalar_lea.vmem %s1397_s26, 512  ;;  %p1615_p1 = scmp.lt.s32.totalorder %s1397_s26, %s1397_s26 }
 0xa23   :  { %p1611_p0 = scmp.ne.s32.totalorder %s1397_s26, %s1610_s0  ;;  %p1616_p2 = scmp.lt.s32.totalorder %s1610_s0, %s1610_s0 }
 0xa25   :  { %p1617_p3 = por %p1616_p2, %p1615_p1 }
 0xa26   :  { %v1282_v47 = vpop.permute.xlu0 %1281 }
 0xa27   :  { %p1618_p4 = pnand %p1617_p3, %p1611_p0 }
 0xa5d   :  { %v1344_v40 = vpop.f32.mrb[36].mxu1 }
 0xa5e   :  { %v1345_v41 = vadd.f32 %v1344_v40, %v1277_v21  ;;  %v1346_v42 = vpop.f32.mrb[37].mxu1 }
 0xa5f   :  { %v1347_v52 = vadd.f32 %v1346_v42, %v1277_v21  ;;  %v1348_v53 = vpop.f32.mrb[38].mxu1 }
 0xa60   :  { %v1349_v46 = vadd.f32 %v1348_v53, %v1282_v47  ;;  %v1350_v43 = vpop.f32.mrb[39].mxu1 }
 0xa61   :  { %v1504_v48 = vpack.c.bf16 %v1347_v52, %v1345_v41  ;;  %v1351_v49 = vadd.f32 %v1350_v43, %v1282_v47 }
 0xa63   :  { %1387 = vst [vmem:[#allocation2] sm:$0xff] %v1504_v48  ;;  %v1505_v50 = vpack.c.bf16 %v1351_v49, %v1349_v46 }
 0xa65   :  { %1388 = vst [vmem:[#allocation2 + $0x8] sm:$0xff] %v1505_v50  ;;  %v1354_v0 = vpop.f32.mrb[40].mxu1 }
 0xa66   :  { %v1355_v1 = vadd.f32 %v1354_v0, %v1287_v44  ;;  %v1356_v2 = vpop.f32.mrb[41].mxu1 }
 0xa67   :  { %v1357_v5 = vadd.f32 %v1356_v2, %v1287_v44  ;;  %v1358_v6 = vpop.f32.mrb[42].mxu1 }
 0xa68   :  { %v1359_v7 = vadd.f32 %v1358_v6, %v1292_v4  ;;  %v1360_v8 = vpop.f32.mrb[43].mxu1 }
 0xa69   :  { %v1506_v56 = vpack.c.bf16 %v1357_v5, %v1355_v1  ;;  %v1361_v9 = vadd.f32 %v1360_v8, %v1292_v4 }
 0xa6b   :  { %1389 = vst [vmem:[#allocation2 + $0x10] sm:$0xff] %v1506_v56  ;;  %v1507_v10 = vpack.c.bf16 %v1361_v9, %v1359_v7 }
 0xa6d   :  { %1390 = vst [vmem:[#allocation2 + $0x18] sm:$0xff] %v1507_v10 }
 0xa6e   :  { %1621 = shalt.err (!%p1618_p4)
}
 0xa6f   :  { %s1622_s6 = scalar_lea.hbm %s2185_s11, 512 }
 0xa70   :  { %p1623_p5 = scmp.ne.s32.totalorder %s2185_s11, %s1622_s6  ;;  %p1626_p6 = scmp.lt.u32.totalorder %s1622_s6, %s2185_s11 }
 0xa72   :  { %p1628_p7 = pnand %p1626_p6, %p1623_p5 }
 0xa74   :  { %1631 = shalt.err (!%p1628_p7)
}
 0xa75   :  { %s1640_s2 = smov 128  }
 0xa76   :  { %1402 = dma.vmem_to_hbm [thread:$0]  %s1397_s26, 512, %s2185_s11, [#allocation3], %s1640_s2, %s1640_s2, %s1638_s3  }
 0xa77   :  { %1632 = dma.done.wait [#allocation3], 512  }
 0xa78   :  { %1633 = vsyncadd [#allocation3], 4294966784 }
 0xa79   :  { %1410 = vsyncpa [#allocation3], 1 }

</bundles_post_ra>
